<compile_context>
chip_gen: v7x
topology: tpu7x:2x2x1
jax: 0.10.0
libtpu: 0.0.40
codegen_flags: <defaults>
</compile_context>

<pallas_src>
import jax
import jax.numpy as jnp
from jax import lax
from jax.experimental import pallas as pl
from jax.experimental.pallas import tpu as pltpu


# ---------------------------------------------------------------------------
# Packed column-vector slab layout (shared by wrapper and kernel factory)
# ---------------------------------------------------------------------------
def _vec_layout(C, HID):
    names = [('w_ln1', C), ('b_ln1', C), ('b_qkv', 3 * C), ('b_qdw', 3 * C),
             ('temp', C), ('b_proj', C), ('w_ln2', C), ('b_ln2', C),
             ('b_pw1', HID), ('b_dw2', HID), ('b_pw2', C)]
    off, layout = 0, {}
    for name, sz in names:
        layout[name] = (off, sz)
        off += sz
    return layout, off


# ---------------------------------------------------------------------------
# Pallas kernel
# ---------------------------------------------------------------------------
def _make_kernel(H, W, C, HID, imgs_per_block, mxu_dtype):
    HW = H * W
    N = imgs_per_block * HW          # lane extent of this block
    OFF, _ = _vec_layout(C, HID)

    def kernel(x_ref, mask_ref, vec_ref, head_bias_ref,
               w_qkv_ref, w_qdw_ref, w_proj_ref,
               w_pw1_ref, w_dw2_ref, w_pw2_ref,
               o_ref):
        x = x_ref[...]                                   # (C, N) lane-dense
        mask = mask_ref[...]                             # (9, N) tap masks
        vec = vec_ref[...]                               # (Nvec, 1) packed slab

        def seg(name):
            o, n = OFF[name]
            return vec[o:o + n, :]                       # static slice, (n, 1)

        mx = lambda a: a.astype(mxu_dtype)               # bf16 gate (f32 at toy size)

        def _layernorm(z, w, b):
            # WithBias_LayerNorm over channels (axis 0), eps=1e-5, biased var.
            mu = jnp.mean(z, axis=0, keepdims=True)
            var = jnp.mean((z - mu) ** 2, axis=0, keepdims=True)
            return (z - mu) * lax.rsqrt(var + 1e-5) * w + b

        def _gelu(z):
            # tanh-approx GELU (EUP tanh); matches exact erf GELU to ~5e-4.
            c = 0.7978845608028654  # sqrt(2/pi)
            return 0.5 * z * (1.0 + jnp.tanh(c * (z + 0.044715 * z * z * z)))

        def _dwconv3x3(z, w_ref, b_col):
            # depthwise 3x3, stride 1, padding 1 (cross-correlation like torch)
            # as 8 lane-rolls + boundary masks; z is (nc, N).
            w = w_ref[...]                               # (nc, 9), loaded once
            wcols = [w[:, i:i + 1] for i in range(9)]    # hoisted weight columns
            acc = z * wcols[4]                           # center tap: mask all-ones
            for ky in range(3):
                for kx in range(3):
                    idx = ky * 3 + kx
                    if idx == 4:
                        continue
                    s = (ky - 1) * W + (kx - 1)          # want z[:, p + s]
                    shifted = pltpu.roll(z, shift=(-s) % N, axis=1)
                    acc = acc + (shifted * wcols[idx]) * mask[idx:idx + 1, :]
            return acc + b_col

        # ---------------- attention branch ----------------
        y = _layernorm(x, seg('w_ln1'), seg('b_ln1'))
        # fused qkv 1x1 conv + ONE depthwise pass over 3C channels
        qkv = jnp.dot(mx(w_qkv_ref[...]), mx(y),
                      preferred_element_type=jnp.float32) + seg('b_qkv')
        qkv = _dwconv3x3(qkv, w_qdw_ref, seg('b_qdw'))   # (3C, N)
        q = qkv[:C, :]
        k = qkv[C:2 * C, :]
        v = qkv[2 * C:, :]

        temp = seg('temp')                               # per-channel temperature
        hb = head_bias_ref[...]                          # block-diag head mask

        # per-image channel attention (L2 norm / gram / softmax are per image);
        # static loop over the images folded into this lane block.
        outs = []
        for b in range(imgs_per_block):
            sl = slice(b * HW, (b + 1) * HW)             # lane-aligned static slice
            qb, kb, vb = q[:, sl], k[:, sl], v[:, sl]
            # F.normalize over spatial axis, eps=1e-12
            qn = qb * lax.rsqrt(jnp.maximum(jnp.sum(qb * qb, axis=1, keepdims=True), 1e-24))
            kn = kb * lax.rsqrt(jnp.maximum(jnp.sum(kb * kb, axis=1, keepdims=True), 1e-24))
            attn = lax.dot_general(mx(qn), mx(kn), (((1,), (1,)), ((), ())),
                                   preferred_element_type=jnp.float32)   # (C, C)
            # no row-max subtraction: |temp * cos| <= |temp| (wrapper asserts < 80);
            # cross-head -1e30 entries underflow to exactly 0.
            attn = jnp.exp(attn * temp + hb)
            denom = jnp.sum(attn, axis=-1, keepdims=True)
            attn = attn * pl.reciprocal(denom, approx=False)
            outs.append(jnp.dot(mx(attn), mx(vb),
                                preferred_element_type=jnp.float32))      # (C, HW)
        out = outs[0] if imgs_per_block == 1 else jnp.concatenate(outs, axis=1)
        out = jnp.dot(mx(w_proj_ref[...]), mx(out),
                      preferred_element_type=jnp.float32) + seg('b_proj')
        x = x + out                                      # residual 1

        # ---------------- FFN branch ----------------
        y = _layernorm(x, seg('w_ln2'), seg('b_ln2'))
        h = jnp.dot(mx(w_pw1_ref[...]), mx(y),
                    preferred_element_type=jnp.float32) + seg('b_pw1')
        h = _dwconv3x3(h, w_dw2_ref, seg('b_dw2'))       # (HID, N)
        h = _gelu(h)
        h = jnp.dot(mx(w_pw2_ref[...]), mx(h),
                    preferred_element_type=jnp.float32) + seg('b_pw2')
        o_ref[...] = x + h                               # residual 2, lane-dense store

    return kernel


# ---------------------------------------------------------------------------
# Wrapper
# ---------------------------------------------------------------------------
def transformer_block_pallas(x_nchw, P, *, lane_blocks=1):
    # lane_blocks=1: single grid step (best on single-TC v5e/v6e at this size).
    # lane_blocks=2 on v7x shards the folded lane axis across both TensorCores.
    B, C, H, W = x_nchw.shape
    HW = H * W
    HID = P['w_pw1'].shape[0]
    heads = P['temperature'].shape[0]
    ch = C // heads
    assert B % lane_blocks == 0
    bpb = B // lane_blocks
    N = bpb * HW

    # softmax skips the row-max subtraction -> temperature must stay small
    assert float(jnp.max(jnp.abs(jnp.asarray(P['temperature'])))) < 80.0

    f32 = lambda a: jnp.asarray(a, jnp.float32)
    col = lambda a: f32(a).reshape(-1, 1)

    # NCHW -> (C, B*HW): fold the batch onto the lane axis (one transpose).
    x2d = jnp.transpose(x_nchw.reshape(B, C, HW).astype(jnp.float32),
                        (1, 0, 2)).reshape(C, B * HW)

    # boundary masks for the 9 dwconv taps (per image), tiled over the block's
    # images; they also kill batch-seam / roll-wraparound taps.
    pos = jnp.arange(HW)
    colp, rowp = pos % W, pos // W

    def tap_mask(dy, dx):
        ok = jnp.ones((HW,), bool)
        if dx == 1:
            ok = ok & (colp < W - 1)
        if dx == -1:
            ok = ok & (colp > 0)
        if dy == 1:
            ok = ok & (rowp < H - 1)
        if dy == -1:
            ok = ok & (rowp > 0)
        return ok

    masks = jnp.stack([tap_mask(ky - 1, kx - 1)
                       for ky in range(3) for kx in range(3)]).astype(jnp.float32)
    masks = jnp.tile(masks, (1, bpb))                    # (9, N)

    head_id = jnp.repeat(jnp.arange(heads), ch)
    head_bias = jnp.where(head_id[:, None] == head_id[None, :],
                          0.0, -1e30).astype(jnp.float32)           # (C, C)

    # pack all tiny per-channel column vectors into one slab
    layout, nvec = _vec_layout(C, HID)
    segs = {
        'w_ln1': col(P['w_ln1']), 'b_ln1': col(P['b_ln1']),
        'b_qkv': col(P['b_qkv']), 'b_qdw': col(P['b_qdw']),
        'temp': col(jnp.repeat(f32(P['temperature']).reshape(-1), ch)),
        'b_proj': col(P['b_proj']),
        'w_ln2': col(P['w_ln2']), 'b_ln2': col(P['b_ln2']),
        'b_pw1': col(P['b_pw1']), 'b_dw2': col(P['b_dw2']),
        'b_pw2': col(P['b_pw2']),
    }
    vec = jnp.concatenate([segs[name] for name in layout], axis=0)   # (nvec, 1)
    assert vec.shape[0] == nvec

    # bf16 MXU operands only pay off (and only stay inside tolerance margins)
    # at production channel counts.
    mxu_dtype = jnp.bfloat16 if C >= 64 else jnp.float32

    params = [masks, vec, head_bias,
              f32(P['w_qkv']), f32(P['w_qdw']), f32(P['w_proj']),
              f32(P['w_pw1']), f32(P['w_dw2']), f32(P['w_pw2'])]

    kernel = _make_kernel(H, W, C, HID, bpb, mxu_dtype)

    const_spec = lambda p: pl.BlockSpec(p.shape, lambda i: (0, 0))

    out2d = pl.pallas_call(
        kernel,
        out_shape=jax.ShapeDtypeStruct((C, B * HW), jnp.float32),
        grid_spec=pltpu.PrefetchScalarGridSpec(
            num_scalar_prefetch=0,
            grid=(lane_blocks,),
            in_specs=[pl.BlockSpec((C, N), lambda i: (0, i))]
                     + [const_spec(p) for p in params],
            out_specs=pl.BlockSpec((C, N), lambda i: (0, i)),
        ),
        compiler_params=pltpu.CompilerParams(dimension_semantics=("parallel",)),
    )(x2d, *params)

    # (C, B*HW) -> NCHW
    return jnp.transpose(out2d.reshape(C, B, HW), (1, 0, 2)).reshape(B, C, H, W)


# ---------------------------------------------------------------------------
# Pure-JAX reference (mirrors the PyTorch forward)
# ---------------------------------------------------------------------------
def transformer_block_reference(x_nchw, P):
    B, C, H, W = x_nchw.shape
    HW = H * W
    heads = P['temperature'].shape[0]
    ch = C // heads
    hp = lax.Precision.HIGHEST

    x = x_nchw.reshape(B, C, HW)

    def ln(z, w, b):
        mu = jnp.mean(z, axis=1, keepdims=True)
        var = jnp.mean((z - mu) ** 2, axis=1, keepdims=True)
        return (z - mu) / jnp.sqrt(var + 1e-5) * w[None, :, None] + b[None, :, None]

    def dw3x3(z, w9, bias):
        nc = z.shape[1]
        zs = z.reshape(B, nc, H, W)
        p = jnp.pad(zs, ((0, 0), (0, 0), (1, 1), (1, 1)))
        acc = jnp.zeros_like(zs)
        for ky in range(3):
            for kx in range(3):
                acc = acc + p[:, :, ky:ky + H, kx:kx + W] * w9[None, :, ky * 3 + kx, None, None]
        return (acc + bias[None, :, None, None]).reshape(B, nc, HW)

    # attention
    y = ln(x, P['w_ln1'], P['b_ln1'])
    qkv = jnp.einsum('dc,bcp->bdp', P['w_qkv'], y, precision=hp) + P['b_qkv'][None, :, None]
    qkv = dw3x3(qkv, P['w_qdw'], P['b_qdw'])
    q, k, v = qkv[:, :C], qkv[:, C:2 * C], qkv[:, 2 * C:]
    qh = q.reshape(B, heads, ch, HW)
    kh = k.reshape(B, heads, ch, HW)
    vh = v.reshape(B, heads, ch, HW)
    qn = qh / jnp.maximum(jnp.linalg.norm(qh, axis=-1, keepdims=True), 1e-12)
    kn = kh / jnp.maximum(jnp.linalg.norm(kh, axis=-1, keepdims=True), 1e-12)
    attn = jnp.einsum('bhcp,bhdp->bhcd', qn, kn, precision=hp)
    attn = attn * P['temperature'][None, :, None, None]
    attn = jax.nn.softmax(attn, axis=-1)
    out = jnp.einsum('bhcd,bhdp->bhcp', attn, vh, precision=hp).reshape(B, C, HW)
    out = jnp.einsum('dc,bcp->bdp', P['w_proj'], out, precision=hp) + P['b_proj'][None, :, None]
    x = x + out

    # ffn
    y = ln(x, P['w_ln2'], P['b_ln2'])
    h = jnp.einsum('dc,bcp->bdp', P['w_pw1'], y, precision=hp) + P['b_pw1'][None, :, None]
    h = dw3x3(h, P['w_dw2'], P['b_dw2'])
    h = jax.nn.gelu(h, approximate=False)
    h = jnp.einsum('dc,bcp->bdp', P['w_pw2'], h, precision=hp) + P['b_pw2'][None, :, None]
    x = x + h

    return x.reshape(B, C, H, W)


# ---------------------------------------------------------------------------
# Main
# ---------------------------------------------------------------------------
if __name__ == "__main__":
    B, C, H, W = 2, 4, 16, 16     # dim=4
    heads = 2
    ffn_expansion_factor = 2
    HID = C * ffn_expansion_factor

    key = jax.random.PRNGKey(0)
    keys = jax.random.split(key, 32)

    def rnd(i, shape, scale=0.1):
        return (scale * jax.random.normal(keys[i], shape)).astype(jnp.float32)

    # Deterministic synthetic parameters (shapes follow the PyTorch module).
    # 1x1 conv weights stored as (Cout, Cin) = torch conv weight[:, :, 0, 0];
    # depthwise 3x3 weights as (C, 9) with tap index = ky*3 + kx; biases (C,).
    P = {
        'w_ln1': 1.0 + rnd(0, (C,)), 'b_ln1': rnd(1, (C,)),
        'w_qkv': rnd(2, (3 * C, C), 0.3), 'b_qkv': rnd(3, (3 * C,)),
        'w_qdw': rnd(4, (3 * C, 9), 0.3), 'b_qdw': rnd(5, (3 * C,)),
        'temperature': 1.0 + rnd(6, (heads,)),
        'w_proj': rnd(7, (C, C), 0.3), 'b_proj': rnd(8, (C,)),
        'w_ln2': 1.0 + rnd(9, (C,)), 'b_ln2': rnd(10, (C,)),
        'w_pw1': rnd(11, (HID, C), 0.3), 'b_pw1': rnd(12, (HID,)),
        'w_dw2': rnd(13, (HID, 9), 0.3), 'b_dw2': rnd(14, (HID,)),
        'w_pw2': rnd(15, (C, HID), 0.3), 'b_pw2': rnd(16, (C,)),
    }

    x = jax.random.normal(keys[17], (B, C, H, W), jnp.float32)

    out = transformer_block_pallas(x, P)
    out = jax.block_until_ready(out)

    ref = transformer_block_reference(x, P)
    err = float(jnp.max(jnp.abs(out - ref)))
    if out.shape != x.shape or not err < 5e-3:
        raise AssertionError(f"mismatch: shape={out.shape} max_abs_err={err}")

    print("KERNEL_OK")
</pallas_src>

<mosaic_0001>
module attributes {stable_mosaic.version = 11 : i64} {
  func.func @kernel(%arg0: i32, %arg1: memref<4x512xf32, #tpu.memory_space<vmem>>, %arg2: memref<9x512xf32, #tpu.memory_space<vmem>>, %arg3: memref<68x1xf32, #tpu.memory_space<vmem>>, %arg4: memref<4x4xf32, #tpu.memory_space<vmem>>, %arg5: memref<12x4xf32, #tpu.memory_space<vmem>>, %arg6: memref<12x9xf32, #tpu.memory_space<vmem>>, %arg7: memref<4x4xf32, #tpu.memory_space<vmem>>, %arg8: memref<8x4xf32, #tpu.memory_space<vmem>>, %arg9: memref<8x9xf32, #tpu.memory_space<vmem>>, %arg10: memref<4x8xf32, #tpu.memory_space<vmem>>, %arg11: memref<4x512xf32, #tpu.memory_space<vmem>>) attributes {dimension_semantics = [#tpu.dimension_semantics<parallel>], iteration_bounds = array<i64: 1>, scalar_prefetch = 0 : i64, scratch_operands = 0 : i64, tpu.core_type = #tpu.core_type<tc>, window_params = [{transform_indices = @transform_0, window_bounds = array<i64: 4, 512>}, {pipeline_mode = #tpu.pipeline_mode<synchronous>, transform_indices = @transform_1, window_bounds = array<i64: 9, 512>}, {pipeline_mode = #tpu.pipeline_mode<synchronous>, transform_indices = @transform_2, window_bounds = array<i64: 68, 1>}, {pipeline_mode = #tpu.pipeline_mode<synchronous>, transform_indices = @transform_3, window_bounds = array<i64: 4, 4>}, {pipeline_mode = #tpu.pipeline_mode<synchronous>, transform_indices = @transform_4, window_bounds = array<i64: 12, 4>}, {pipeline_mode = #tpu.pipeline_mode<synchronous>, transform_indices = @transform_5, window_bounds = array<i64: 12, 9>}, {pipeline_mode = #tpu.pipeline_mode<synchronous>, transform_indices = @transform_6, window_bounds = array<i64: 4, 4>}, {pipeline_mode = #tpu.pipeline_mode<synchronous>, transform_indices = @transform_7, window_bounds = array<i64: 8, 4>}, {pipeline_mode = #tpu.pipeline_mode<synchronous>, transform_indices = @transform_8, window_bounds = array<i64: 8, 9>}, {pipeline_mode = #tpu.pipeline_mode<synchronous>, transform_indices = @transform_9, window_bounds = array<i64: 4, 8>}, {transform_indices = @transform_10, window_bounds = array<i64: 4, 512>}]} {
    %c0 = arith.constant 0 : index
    %c0_0 = arith.constant 0 : index
    %0 = vector.load %arg1[%c0, %c0_0] : memref<4x512xf32, #tpu.memory_space<vmem>>, vector<4x512xf32>
    %c0_1 = arith.constant 0 : index
    %c0_2 = arith.constant 0 : index
    %1 = vector.load %arg2[%c0_1, %c0_2] : memref<9x512xf32, #tpu.memory_space<vmem>>, vector<9x512xf32>
    %c0_3 = arith.constant 0 : index
    %c0_4 = arith.constant 0 : index
    %2 = vector.load %arg3[%c0_3, %c0_4] : memref<68x1xf32, #tpu.memory_space<vmem>>, vector<68x1xf32>
    %3 = vector.extract_strided_slice %2 {offsets = [0, 0], sizes = [4, 1], strides = [1, 1]} : vector<68x1xf32> to vector<4x1xf32>
    %4 = vector.extract_strided_slice %2 {offsets = [4, 0], sizes = [4, 1], strides = [1, 1]} : vector<68x1xf32> to vector<4x1xf32>
    %cst = arith.constant dense<0.000000e+00> : vector<512xf32>
    %5 = vector.multi_reduction <add>, %0, %cst [0] : vector<4x512xf32> to vector<512xf32>
    %6 = vector.shape_cast %5 : vector<512xf32> to vector<1x512xf32>
    %cst_5 = arith.constant 4.000000e+00 : f32
    %7 = vector.broadcast %cst_5 : f32 to vector<1x512xf32>
    %8 = arith.divf %6, %7 : vector<1x512xf32>
    %9 = vector.broadcast %8 : vector<1x512xf32> to vector<4x512xf32>
    %10 = arith.subf %0, %9 : vector<4x512xf32>
    %11 = arith.mulf %10, %10 : vector<4x512xf32>
    %cst_6 = arith.constant dense<0.000000e+00> : vector<512xf32>
    %12 = vector.multi_reduction <add>, %11, %cst_6 [0] : vector<4x512xf32> to vector<512xf32>
    %13 = vector.shape_cast %12 : vector<512xf32> to vector<1x512xf32>
    %cst_7 = arith.constant 4.000000e+00 : f32
    %14 = vector.broadcast %cst_7 : f32 to vector<1x512xf32>
    %15 = arith.divf %13, %14 : vector<1x512xf32>
    %16 = vector.broadcast %8 : vector<1x512xf32> to vector<4x512xf32>
    %17 = arith.subf %0, %16 : vector<4x512xf32>
    %cst_8 = arith.constant 9.99999974E-6 : f32
    %18 = vector.broadcast %cst_8 : f32 to vector<1x512xf32>
    %19 = arith.addf %15, %18 : vector<1x512xf32>
    %20 = math.rsqrt %19 : vector<1x512xf32>
    %21 = vector.broadcast %20 : vector<1x512xf32> to vector<4x512xf32>
    %22 = arith.mulf %17, %21 : vector<4x512xf32>
    %23 = vector.broadcast %3 : vector<4x1xf32> to vector<4x512xf32>
    %24 = arith.mulf %22, %23 : vector<4x512xf32>
    %25 = vector.broadcast %4 : vector<4x1xf32> to vector<4x512xf32>
    %26 = arith.addf %24, %25 : vector<4x512xf32>
    %c0_9 = arith.constant 0 : index
    %c0_10 = arith.constant 0 : index
    %27 = vector.load %arg5[%c0_9, %c0_10] : memref<12x4xf32, #tpu.memory_space<vmem>>, vector<12x4xf32>
    %cst_11 = arith.constant dense<0.000000e+00> : vector<12x512xf32>
    %28 = tpu.matmul %27, %26, %cst_11 {dimension_numbers = #tpu.dot_dimension_numbers<[1], [0], [0], [1], [0, 0, 1, 1], [], []>} : vector<12x4xf32>, vector<4x512xf32>, vector<12x512xf32> -> vector<12x512xf32>
    %29 = vector.extract_strided_slice %2 {offsets = [8, 0], sizes = [12, 1], strides = [1, 1]} : vector<68x1xf32> to vector<12x1xf32>
    %30 = vector.broadcast %29 : vector<12x1xf32> to vector<12x512xf32>
    %31 = arith.addf %28, %30 : vector<12x512xf32>
    %32 = vector.extract_strided_slice %2 {offsets = [20, 0], sizes = [12, 1], strides = [1, 1]} : vector<68x1xf32> to vector<12x1xf32>
    %c0_12 = arith.constant 0 : index
    %c0_13 = arith.constant 0 : index
    %33 = vector.load %arg6[%c0_12, %c0_13] : memref<12x9xf32, #tpu.memory_space<vmem>>, vector<12x9xf32>
    %34 = vector.extract_strided_slice %33 {offsets = [0, 0], sizes = [12, 1], strides = [1, 1]} : vector<12x9xf32> to vector<12x1xf32>
    %35 = vector.extract_strided_slice %33 {offsets = [0, 1], sizes = [12, 1], strides = [1, 1]} : vector<12x9xf32> to vector<12x1xf32>
    %36 = vector.extract_strided_slice %33 {offsets = [0, 2], sizes = [12, 1], strides = [1, 1]} : vector<12x9xf32> to vector<12x1xf32>
    %37 = vector.extract_strided_slice %33 {offsets = [0, 3], sizes = [12, 1], strides = [1, 1]} : vector<12x9xf32> to vector<12x1xf32>
    %38 = vector.extract_strided_slice %33 {offsets = [0, 4], sizes = [12, 1], strides = [1, 1]} : vector<12x9xf32> to vector<12x1xf32>
    %39 = vector.extract_strided_slice %33 {offsets = [0, 5], sizes = [12, 1], strides = [1, 1]} : vector<12x9xf32> to vector<12x1xf32>
    %40 = vector.extract_strided_slice %33 {offsets = [0, 6], sizes = [12, 1], strides = [1, 1]} : vector<12x9xf32> to vector<12x1xf32>
    %41 = vector.extract_strided_slice %33 {offsets = [0, 7], sizes = [12, 1], strides = [1, 1]} : vector<12x9xf32> to vector<12x1xf32>
    %42 = vector.extract_strided_slice %33 {offsets = [0, 8], sizes = [12, 1], strides = [1, 1]} : vector<12x9xf32> to vector<12x1xf32>
    %43 = vector.broadcast %38 : vector<12x1xf32> to vector<12x512xf32>
    %44 = arith.mulf %31, %43 : vector<12x512xf32>
    %c17_i32 = arith.constant 17 : i32
    %45 = tpu.dynamic_rotate %31 by %c17_i32 dim 1 : vector<12x512xf32>, i32 -> vector<12x512xf32>
    %46 = vector.broadcast %34 : vector<12x1xf32> to vector<12x512xf32>
    %47 = arith.mulf %45, %46 : vector<12x512xf32>
    %48 = vector.extract_strided_slice %1 {offsets = [0, 0], sizes = [1, 512], strides = [1, 1]} : vector<9x512xf32> to vector<1x512xf32>
    %49 = vector.broadcast %48 : vector<1x512xf32> to vector<12x512xf32>
    %50 = arith.mulf %47, %49 : vector<12x512xf32>
    %51 = arith.addf %44, %50 : vector<12x512xf32>
    %c16_i32 = arith.constant 16 : i32
    %52 = tpu.dynamic_rotate %31 by %c16_i32 dim 1 : vector<12x512xf32>, i32 -> vector<12x512xf32>
    %53 = vector.broadcast %35 : vector<12x1xf32> to vector<12x512xf32>
    %54 = arith.mulf %52, %53 : vector<12x512xf32>
    %55 = vector.extract_strided_slice %1 {offsets = [1, 0], sizes = [1, 512], strides = [1, 1]} : vector<9x512xf32> to vector<1x512xf32>
    %56 = vector.broadcast %55 : vector<1x512xf32> to vector<12x512xf32>
    %57 = arith.mulf %54, %56 : vector<12x512xf32>
    %58 = arith.addf %51, %57 : vector<12x512xf32>
    %c15_i32 = arith.constant 15 : i32
    %59 = tpu.dynamic_rotate %31 by %c15_i32 dim 1 : vector<12x512xf32>, i32 -> vector<12x512xf32>
    %60 = vector.broadcast %36 : vector<12x1xf32> to vector<12x512xf32>
    %61 = arith.mulf %59, %60 : vector<12x512xf32>
    %62 = vector.extract_strided_slice %1 {offsets = [2, 0], sizes = [1, 512], strides = [1, 1]} : vector<9x512xf32> to vector<1x512xf32>
    %63 = vector.broadcast %62 : vector<1x512xf32> to vector<12x512xf32>
    %64 = arith.mulf %61, %63 : vector<12x512xf32>
    %65 = arith.addf %58, %64 : vector<12x512xf32>
    %c1_i32 = arith.constant 1 : i32
    %66 = tpu.dynamic_rotate %31 by %c1_i32 dim 1 : vector<12x512xf32>, i32 -> vector<12x512xf32>
    %67 = vector.broadcast %37 : vector<12x1xf32> to vector<12x512xf32>
    %68 = arith.mulf %66, %67 : vector<12x512xf32>
    %69 = vector.extract_strided_slice %1 {offsets = [3, 0], sizes = [1, 512], strides = [1, 1]} : vector<9x512xf32> to vector<1x512xf32>
    %70 = vector.broadcast %69 : vector<1x512xf32> to vector<12x512xf32>
    %71 = arith.mulf %68, %70 : vector<12x512xf32>
    %72 = arith.addf %65, %71 : vector<12x512xf32>
    %c511_i32 = arith.constant 511 : i32
    %73 = tpu.dynamic_rotate %31 by %c511_i32 dim 1 : vector<12x512xf32>, i32 -> vector<12x512xf32>
    %74 = vector.broadcast %39 : vector<12x1xf32> to vector<12x512xf32>
    %75 = arith.mulf %73, %74 : vector<12x512xf32>
    %76 = vector.extract_strided_slice %1 {offsets = [5, 0], sizes = [1, 512], strides = [1, 1]} : vector<9x512xf32> to vector<1x512xf32>
    %77 = vector.broadcast %76 : vector<1x512xf32> to vector<12x512xf32>
    %78 = arith.mulf %75, %77 : vector<12x512xf32>
    %79 = arith.addf %72, %78 : vector<12x512xf32>
    %c497_i32 = arith.constant 497 : i32
    %80 = tpu.dynamic_rotate %31 by %c497_i32 dim 1 : vector<12x512xf32>, i32 -> vector<12x512xf32>
    %81 = vector.broadcast %40 : vector<12x1xf32> to vector<12x512xf32>
    %82 = arith.mulf %80, %81 : vector<12x512xf32>
    %83 = vector.extract_strided_slice %1 {offsets = [6, 0], sizes = [1, 512], strides = [1, 1]} : vector<9x512xf32> to vector<1x512xf32>
    %84 = vector.broadcast %83 : vector<1x512xf32> to vector<12x512xf32>
    %85 = arith.mulf %82, %84 : vector<12x512xf32>
    %86 = arith.addf %79, %85 : vector<12x512xf32>
    %c496_i32 = arith.constant 496 : i32
    %87 = tpu.dynamic_rotate %31 by %c496_i32 dim 1 : vector<12x512xf32>, i32 -> vector<12x512xf32>
    %88 = vector.broadcast %41 : vector<12x1xf32> to vector<12x512xf32>
    %89 = arith.mulf %87, %88 : vector<12x512xf32>
    %90 = vector.extract_strided_slice %1 {offsets = [7, 0], sizes = [1, 512], strides = [1, 1]} : vector<9x512xf32> to vector<1x512xf32>
    %91 = vector.broadcast %90 : vector<1x512xf32> to vector<12x512xf32>
    %92 = arith.mulf %89, %91 : vector<12x512xf32>
    %93 = arith.addf %86, %92 : vector<12x512xf32>
    %c495_i32 = arith.constant 495 : i32
    %94 = tpu.dynamic_rotate %31 by %c495_i32 dim 1 : vector<12x512xf32>, i32 -> vector<12x512xf32>
    %95 = vector.broadcast %42 : vector<12x1xf32> to vector<12x512xf32>
    %96 = arith.mulf %94, %95 : vector<12x512xf32>
    %97 = vector.extract_strided_slice %1 {offsets = [8, 0], sizes = [1, 512], strides = [1, 1]} : vector<9x512xf32> to vector<1x512xf32>
    %98 = vector.broadcast %97 : vector<1x512xf32> to vector<12x512xf32>
    %99 = arith.mulf %96, %98 : vector<12x512xf32>
    %100 = arith.addf %93, %99 : vector<12x512xf32>
    %101 = vector.broadcast %32 : vector<12x1xf32> to vector<12x512xf32>
    %102 = arith.addf %100, %101 : vector<12x512xf32>
    %103 = vector.extract_strided_slice %102 {offsets = [0, 0], sizes = [4, 512], strides = [1, 1]} : vector<12x512xf32> to vector<4x512xf32>
    %104 = vector.extract_strided_slice %102 {offsets = [4, 0], sizes = [4, 512], strides = [1, 1]} : vector<12x512xf32> to vector<4x512xf32>
    %105 = vector.extract_strided_slice %102 {offsets = [8, 0], sizes = [4, 512], strides = [1, 1]} : vector<12x512xf32> to vector<4x512xf32>
    %106 = vector.extract_strided_slice %2 {offsets = [32, 0], sizes = [4, 1], strides = [1, 1]} : vector<68x1xf32> to vector<4x1xf32>
    %c0_14 = arith.constant 0 : index
    %c0_15 = arith.constant 0 : index
    %107 = vector.load %arg4[%c0_14, %c0_15] : memref<4x4xf32, #tpu.memory_space<vmem>>, vector<4x4xf32>
    %108 = vector.extract_strided_slice %103 {offsets = [0, 0], sizes = [4, 256], strides = [1, 1]} : vector<4x512xf32> to vector<4x256xf32>
    %109 = vector.extract_strided_slice %104 {offsets = [0, 0], sizes = [4, 256], strides = [1, 1]} : vector<4x512xf32> to vector<4x256xf32>
    %110 = vector.extract_strided_slice %105 {offsets = [0, 0], sizes = [4, 256], strides = [1, 1]} : vector<4x512xf32> to vector<4x256xf32>
    %111 = arith.mulf %108, %108 : vector<4x256xf32>
    %cst_16 = arith.constant dense<0.000000e+00> : vector<4xf32>
    %112 = vector.multi_reduction <add>, %111, %cst_16 [1] : vector<4x256xf32> to vector<4xf32>
    %113 = vector.shape_cast %112 : vector<4xf32> to vector<4x1xf32>
    %cst_17 = arith.constant 1.000000e-24 : f32
    %114 = vector.broadcast %cst_17 : f32 to vector<4x1xf32>
    %115 = arith.maximumf %113, %114 : vector<4x1xf32>
    %116 = math.rsqrt %115 : vector<4x1xf32>
    %117 = vector.broadcast %116 : vector<4x1xf32> to vector<4x256xf32>
    %118 = arith.mulf %108, %117 : vector<4x256xf32>
    %119 = arith.mulf %109, %109 : vector<4x256xf32>
    %cst_18 = arith.constant dense<0.000000e+00> : vector<4xf32>
    %120 = vector.multi_reduction <add>, %119, %cst_18 [1] : vector<4x256xf32> to vector<4xf32>
    %121 = vector.shape_cast %120 : vector<4xf32> to vector<4x1xf32>
    %cst_19 = arith.constant 1.000000e-24 : f32
    %122 = vector.broadcast %cst_19 : f32 to vector<4x1xf32>
    %123 = arith.maximumf %121, %122 : vector<4x1xf32>
    %124 = math.rsqrt %123 : vector<4x1xf32>
    %125 = vector.broadcast %124 : vector<4x1xf32> to vector<4x256xf32>
    %126 = arith.mulf %109, %125 : vector<4x256xf32>
    %cst_20 = arith.constant dense<0.000000e+00> : vector<4x4xf32>
    %127 = tpu.matmul %118, %126, %cst_20 {dimension_numbers = #tpu.dot_dimension_numbers<[1], [1], [0], [0], [0, 0, 1, 0], [], []>} : vector<4x256xf32>, vector<4x256xf32>, vector<4x4xf32> -> vector<4x4xf32>
    %128 = vector.broadcast %106 : vector<4x1xf32> to vector<4x4xf32>
    %129 = arith.mulf %127, %128 : vector<4x4xf32>
    %130 = arith.addf %129, %107 : vector<4x4xf32>
    %131 = math.exp %130 : vector<4x4xf32>
    %cst_21 = arith.constant dense<0.000000e+00> : vector<4xf32>
    %132 = vector.multi_reduction <add>, %131, %cst_21 [1] : vector<4x4xf32> to vector<4xf32>
    %133 = vector.shape_cast %132 : vector<4xf32> to vector<4x1xf32>
    %134 = tpu.reciprocal %133 : vector<4x1xf32> -> vector<4x1xf32>
    %135 = vector.broadcast %134 : vector<4x1xf32> to vector<4x4xf32>
    %136 = arith.mulf %131, %135 : vector<4x4xf32>
    %cst_22 = arith.constant dense<0.000000e+00> : vector<4x256xf32>
    %137 = tpu.matmul %136, %110, %cst_22 {dimension_numbers = #tpu.dot_dimension_numbers<[1], [0], [0], [1], [0, 0, 1, 1], [], []>} : vector<4x4xf32>, vector<4x256xf32>, vector<4x256xf32> -> vector<4x256xf32>
    %138 = vector.extract_strided_slice %103 {offsets = [0, 256], sizes = [4, 256], strides = [1, 1]} : vector<4x512xf32> to vector<4x256xf32>
    %139 = vector.extract_strided_slice %104 {offsets = [0, 256], sizes = [4, 256], strides = [1, 1]} : vector<4x512xf32> to vector<4x256xf32>
    %140 = vector.extract_strided_slice %105 {offsets = [0, 256], sizes = [4, 256], strides = [1, 1]} : vector<4x512xf32> to vector<4x256xf32>
    %141 = arith.mulf %138, %138 : vector<4x256xf32>
    %cst_23 = arith.constant dense<0.000000e+00> : vector<4xf32>
    %142 = vector.multi_reduction <add>, %141, %cst_23 [1] : vector<4x256xf32> to vector<4xf32>
    %143 = vector.shape_cast %142 : vector<4xf32> to vector<4x1xf32>
    %cst_24 = arith.constant 1.000000e-24 : f32
    %144 = vector.broadcast %cst_24 : f32 to vector<4x1xf32>
    %145 = arith.maximumf %143, %144 : vector<4x1xf32>
    %146 = math.rsqrt %145 : vector<4x1xf32>
    %147 = vector.broadcast %146 : vector<4x1xf32> to vector<4x256xf32>
    %148 = arith.mulf %138, %147 : vector<4x256xf32>
    %149 = arith.mulf %139, %139 : vector<4x256xf32>
    %cst_25 = arith.constant dense<0.000000e+00> : vector<4xf32>
    %150 = vector.multi_reduction <add>, %149, %cst_25 [1] : vector<4x256xf32> to vector<4xf32>
    %151 = vector.shape_cast %150 : vector<4xf32> to vector<4x1xf32>
    %cst_26 = arith.constant 1.000000e-24 : f32
    %152 = vector.broadcast %cst_26 : f32 to vector<4x1xf32>
    %153 = arith.maximumf %151, %152 : vector<4x1xf32>
    %154 = math.rsqrt %153 : vector<4x1xf32>
    %155 = vector.broadcast %154 : vector<4x1xf32> to vector<4x256xf32>
    %156 = arith.mulf %139, %155 : vector<4x256xf32>
    %cst_27 = arith.constant dense<0.000000e+00> : vector<4x4xf32>
    %157 = tpu.matmul %148, %156, %cst_27 {dimension_numbers = #tpu.dot_dimension_numbers<[1], [1], [0], [0], [0, 0, 1, 0], [], []>} : vector<4x256xf32>, vector<4x256xf32>, vector<4x4xf32> -> vector<4x4xf32>
    %158 = vector.broadcast %106 : vector<4x1xf32> to vector<4x4xf32>
    %159 = arith.mulf %157, %158 : vector<4x4xf32>
    %160 = arith.addf %159, %107 : vector<4x4xf32>
    %161 = math.exp %160 : vector<4x4xf32>
    %cst_28 = arith.constant dense<0.000000e+00> : vector<4xf32>
    %162 = vector.multi_reduction <add>, %161, %cst_28 [1] : vector<4x4xf32> to vector<4xf32>
    %163 = vector.shape_cast %162 : vector<4xf32> to vector<4x1xf32>
    %164 = tpu.reciprocal %163 : vector<4x1xf32> -> vector<4x1xf32>
    %165 = vector.broadcast %164 : vector<4x1xf32> to vector<4x4xf32>
    %166 = arith.mulf %161, %165 : vector<4x4xf32>
    %cst_29 = arith.constant dense<0.000000e+00> : vector<4x256xf32>
    %167 = tpu.matmul %166, %140, %cst_29 {dimension_numbers = #tpu.dot_dimension_numbers<[1], [0], [0], [1], [0, 0, 1, 1], [], []>} : vector<4x4xf32>, vector<4x256xf32>, vector<4x256xf32> -> vector<4x256xf32>
    %168 = tpu.concatenate %137, %167 in 1 : vector<4x256xf32>, vector<4x256xf32> -> vector<4x512xf32>
    %c0_30 = arith.constant 0 : index
    %c0_31 = arith.constant 0 : index
    %169 = vector.load %arg7[%c0_30, %c0_31] : memref<4x4xf32, #tpu.memory_space<vmem>>, vector<4x4xf32>
    %cst_32 = arith.constant dense<0.000000e+00> : vector<4x512xf32>
    %170 = tpu.matmul %169, %168, %cst_32 {dimension_numbers = #tpu.dot_dimension_numbers<[1], [0], [0], [1], [0, 0, 1, 1], [], []>} : vector<4x4xf32>, vector<4x512xf32>, vector<4x512xf32> -> vector<4x512xf32>
    %171 = vector.extract_strided_slice %2 {offsets = [36, 0], sizes = [4, 1], strides = [1, 1]} : vector<68x1xf32> to vector<4x1xf32>
    %172 = vector.broadcast %171 : vector<4x1xf32> to vector<4x512xf32>
    %173 = arith.addf %170, %172 : vector<4x512xf32>
    %174 = arith.addf %0, %173 : vector<4x512xf32>
    %175 = vector.extract_strided_slice %2 {offsets = [40, 0], sizes = [4, 1], strides = [1, 1]} : vector<68x1xf32> to vector<4x1xf32>
    %176 = vector.extract_strided_slice %2 {offsets = [44, 0], sizes = [4, 1], strides = [1, 1]} : vector<68x1xf32> to vector<4x1xf32>
    %cst_33 = arith.constant dense<0.000000e+00> : vector<512xf32>
    %177 = vector.multi_reduction <add>, %174, %cst_33 [0] : vector<4x512xf32> to vector<512xf32>
    %178 = vector.shape_cast %177 : vector<512xf32> to vector<1x512xf32>
    %cst_34 = arith.constant 4.000000e+00 : f32
    %179 = vector.broadcast %cst_34 : f32 to vector<1x512xf32>
    %180 = arith.divf %178, %179 : vector<1x512xf32>
    %181 = vector.broadcast %180 : vector<1x512xf32> to vector<4x512xf32>
    %182 = arith.subf %174, %181 : vector<4x512xf32>
    %183 = arith.mulf %182, %182 : vector<4x512xf32>
    %cst_35 = arith.constant dense<0.000000e+00> : vector<512xf32>
    %184 = vector.multi_reduction <add>, %183, %cst_35 [0] : vector<4x512xf32> to vector<512xf32>
    %185 = vector.shape_cast %184 : vector<512xf32> to vector<1x512xf32>
    %cst_36 = arith.constant 4.000000e+00 : f32
    %186 = vector.broadcast %cst_36 : f32 to vector<1x512xf32>
    %187 = arith.divf %185, %186 : vector<1x512xf32>
    %188 = vector.broadcast %180 : vector<1x512xf32> to vector<4x512xf32>
    %189 = arith.subf %174, %188 : vector<4x512xf32>
    %cst_37 = arith.constant 9.99999974E-6 : f32
    %190 = vector.broadcast %cst_37 : f32 to vector<1x512xf32>
    %191 = arith.addf %187, %190 : vector<1x512xf32>
    %192 = math.rsqrt %191 : vector<1x512xf32>
    %193 = vector.broadcast %192 : vector<1x512xf32> to vector<4x512xf32>
    %194 = arith.mulf %189, %193 : vector<4x512xf32>
    %195 = vector.broadcast %175 : vector<4x1xf32> to vector<4x512xf32>
    %196 = arith.mulf %194, %195 : vector<4x512xf32>
    %197 = vector.broadcast %176 : vector<4x1xf32> to vector<4x512xf32>
    %198 = arith.addf %196, %197 : vector<4x512xf32>
    %c0_38 = arith.constant 0 : index
    %c0_39 = arith.constant 0 : index
    %199 = vector.load %arg8[%c0_38, %c0_39] : memref<8x4xf32, #tpu.memory_space<vmem>>, vector<8x4xf32>
    %cst_40 = arith.constant dense<0.000000e+00> : vector<8x512xf32>
    %200 = tpu.matmul %199, %198, %cst_40 {dimension_numbers = #tpu.dot_dimension_numbers<[1], [0], [0], [1], [0, 0, 1, 1], [], []>} : vector<8x4xf32>, vector<4x512xf32>, vector<8x512xf32> -> vector<8x512xf32>
    %201 = vector.extract_strided_slice %2 {offsets = [48, 0], sizes = [8, 1], strides = [1, 1]} : vector<68x1xf32> to vector<8x1xf32>
    %202 = vector.broadcast %201 : vector<8x1xf32> to vector<8x512xf32>
    %203 = arith.addf %200, %202 : vector<8x512xf32>
    %204 = vector.extract_strided_slice %2 {offsets = [56, 0], sizes = [8, 1], strides = [1, 1]} : vector<68x1xf32> to vector<8x1xf32>
    %c0_41 = arith.constant 0 : index
    %c0_42 = arith.constant 0 : index
    %205 = vector.load %arg9[%c0_41, %c0_42] : memref<8x9xf32, #tpu.memory_space<vmem>>, vector<8x9xf32>
    %206 = vector.extract_strided_slice %205 {offsets = [0, 0], sizes = [8, 1], strides = [1, 1]} : vector<8x9xf32> to vector<8x1xf32>
    %207 = vector.extract_strided_slice %205 {offsets = [0, 1], sizes = [8, 1], strides = [1, 1]} : vector<8x9xf32> to vector<8x1xf32>
    %208 = vector.extract_strided_slice %205 {offsets = [0, 2], sizes = [8, 1], strides = [1, 1]} : vector<8x9xf32> to vector<8x1xf32>
    %209 = vector.extract_strided_slice %205 {offsets = [0, 3], sizes = [8, 1], strides = [1, 1]} : vector<8x9xf32> to vector<8x1xf32>
    %210 = vector.extract_strided_slice %205 {offsets = [0, 4], sizes = [8, 1], strides = [1, 1]} : vector<8x9xf32> to vector<8x1xf32>
    %211 = vector.extract_strided_slice %205 {offsets = [0, 5], sizes = [8, 1], strides = [1, 1]} : vector<8x9xf32> to vector<8x1xf32>
    %212 = vector.extract_strided_slice %205 {offsets = [0, 6], sizes = [8, 1], strides = [1, 1]} : vector<8x9xf32> to vector<8x1xf32>
    %213 = vector.extract_strided_slice %205 {offsets = [0, 7], sizes = [8, 1], strides = [1, 1]} : vector<8x9xf32> to vector<8x1xf32>
    %214 = vector.extract_strided_slice %205 {offsets = [0, 8], sizes = [8, 1], strides = [1, 1]} : vector<8x9xf32> to vector<8x1xf32>
    %215 = vector.broadcast %210 : vector<8x1xf32> to vector<8x512xf32>
    %216 = arith.mulf %203, %215 : vector<8x512xf32>
    %c17_i32_43 = arith.constant 17 : i32
    %217 = tpu.dynamic_rotate %203 by %c17_i32_43 dim 1 : vector<8x512xf32>, i32 -> vector<8x512xf32>
    %218 = vector.broadcast %206 : vector<8x1xf32> to vector<8x512xf32>
    %219 = arith.mulf %217, %218 : vector<8x512xf32>
    %220 = vector.extract_strided_slice %1 {offsets = [0, 0], sizes = [1, 512], strides = [1, 1]} : vector<9x512xf32> to vector<1x512xf32>
    %221 = vector.broadcast %220 : vector<1x512xf32> to vector<8x512xf32>
    %222 = arith.mulf %219, %221 : vector<8x512xf32>
    %223 = arith.addf %216, %222 : vector<8x512xf32>
    %c16_i32_44 = arith.constant 16 : i32
    %224 = tpu.dynamic_rotate %203 by %c16_i32_44 dim 1 : vector<8x512xf32>, i32 -> vector<8x512xf32>
    %225 = vector.broadcast %207 : vector<8x1xf32> to vector<8x512xf32>
    %226 = arith.mulf %224, %225 : vector<8x512xf32>
    %227 = vector.extract_strided_slice %1 {offsets = [1, 0], sizes = [1, 512], strides = [1, 1]} : vector<9x512xf32> to vector<1x512xf32>
    %228 = vector.broadcast %227 : vector<1x512xf32> to vector<8x512xf32>
    %229 = arith.mulf %226, %228 : vector<8x512xf32>
    %230 = arith.addf %223, %229 : vector<8x512xf32>
    %c15_i32_45 = arith.constant 15 : i32
    %231 = tpu.dynamic_rotate %203 by %c15_i32_45 dim 1 : vector<8x512xf32>, i32 -> vector<8x512xf32>
    %232 = vector.broadcast %208 : vector<8x1xf32> to vector<8x512xf32>
    %233 = arith.mulf %231, %232 : vector<8x512xf32>
    %234 = vector.extract_strided_slice %1 {offsets = [2, 0], sizes = [1, 512], strides = [1, 1]} : vector<9x512xf32> to vector<1x512xf32>
    %235 = vector.broadcast %234 : vector<1x512xf32> to vector<8x512xf32>
    %236 = arith.mulf %233, %235 : vector<8x512xf32>
    %237 = arith.addf %230, %236 : vector<8x512xf32>
    %c1_i32_46 = arith.constant 1 : i32
    %238 = tpu.dynamic_rotate %203 by %c1_i32_46 dim 1 : vector<8x512xf32>, i32 -> vector<8x512xf32>
    %239 = vector.broadcast %209 : vector<8x1xf32> to vector<8x512xf32>
    %240 = arith.mulf %238, %239 : vector<8x512xf32>
    %241 = vector.extract_strided_slice %1 {offsets = [3, 0], sizes = [1, 512], strides = [1, 1]} : vector<9x512xf32> to vector<1x512xf32>
    %242 = vector.broadcast %241 : vector<1x512xf32> to vector<8x512xf32>
    %243 = arith.mulf %240, %242 : vector<8x512xf32>
    %244 = arith.addf %237, %243 : vector<8x512xf32>
    %c511_i32_47 = arith.constant 511 : i32
    %245 = tpu.dynamic_rotate %203 by %c511_i32_47 dim 1 : vector<8x512xf32>, i32 -> vector<8x512xf32>
    %246 = vector.broadcast %211 : vector<8x1xf32> to vector<8x512xf32>
    %247 = arith.mulf %245, %246 : vector<8x512xf32>
    %248 = vector.extract_strided_slice %1 {offsets = [5, 0], sizes = [1, 512], strides = [1, 1]} : vector<9x512xf32> to vector<1x512xf32>
    %249 = vector.broadcast %248 : vector<1x512xf32> to vector<8x512xf32>
    %250 = arith.mulf %247, %249 : vector<8x512xf32>
    %251 = arith.addf %244, %250 : vector<8x512xf32>
    %c497_i32_48 = arith.constant 497 : i32
    %252 = tpu.dynamic_rotate %203 by %c497_i32_48 dim 1 : vector<8x512xf32>, i32 -> vector<8x512xf32>
    %253 = vector.broadcast %212 : vector<8x1xf32> to vector<8x512xf32>
    %254 = arith.mulf %252, %253 : vector<8x512xf32>
    %255 = vector.extract_strided_slice %1 {offsets = [6, 0], sizes = [1, 512], strides = [1, 1]} : vector<9x512xf32> to vector<1x512xf32>
    %256 = vector.broadcast %255 : vector<1x512xf32> to vector<8x512xf32>
    %257 = arith.mulf %254, %256 : vector<8x512xf32>
    %258 = arith.addf %251, %257 : vector<8x512xf32>
    %c496_i32_49 = arith.constant 496 : i32
    %259 = tpu.dynamic_rotate %203 by %c496_i32_49 dim 1 : vector<8x512xf32>, i32 -> vector<8x512xf32>
    %260 = vector.broadcast %213 : vector<8x1xf32> to vector<8x512xf32>
    %261 = arith.mulf %259, %260 : vector<8x512xf32>
    %262 = vector.extract_strided_slice %1 {offsets = [7, 0], sizes = [1, 512], strides = [1, 1]} : vector<9x512xf32> to vector<1x512xf32>
    %263 = vector.broadcast %262 : vector<1x512xf32> to vector<8x512xf32>
    %264 = arith.mulf %261, %263 : vector<8x512xf32>
    %265 = arith.addf %258, %264 : vector<8x512xf32>
    %c495_i32_50 = arith.constant 495 : i32
    %266 = tpu.dynamic_rotate %203 by %c495_i32_50 dim 1 : vector<8x512xf32>, i32 -> vector<8x512xf32>
    %267 = vector.broadcast %214 : vector<8x1xf32> to vector<8x512xf32>
    %268 = arith.mulf %266, %267 : vector<8x512xf32>
    %269 = vector.extract_strided_slice %1 {offsets = [8, 0], sizes = [1, 512], strides = [1, 1]} : vector<9x512xf32> to vector<1x512xf32>
    %270 = vector.broadcast %269 : vector<1x512xf32> to vector<8x512xf32>
    %271 = arith.mulf %268, %270 : vector<8x512xf32>
    %272 = arith.addf %265, %271 : vector<8x512xf32>
    %273 = vector.broadcast %204 : vector<8x1xf32> to vector<8x512xf32>
    %274 = arith.addf %272, %273 : vector<8x512xf32>
    %cst_51 = arith.constant 5.000000e-01 : f32
    %275 = vector.broadcast %cst_51 : f32 to vector<8x512xf32>
    %276 = arith.mulf %275, %274 : vector<8x512xf32>
    %cst_52 = arith.constant 4.471500e-02 : f32
    %277 = vector.broadcast %cst_52 : f32 to vector<8x512xf32>
    %278 = arith.mulf %277, %274 : vector<8x512xf32>
    %279 = arith.mulf %278, %274 : vector<8x512xf32>
    %280 = arith.mulf %279, %274 : vector<8x512xf32>
    %281 = arith.addf %274, %280 : vector<8x512xf32>
    %cst_53 = arith.constant 0.797884583 : f32
    %282 = vector.broadcast %cst_53 : f32 to vector<8x512xf32>
    %283 = arith.mulf %282, %281 : vector<8x512xf32>
    %284 = math.tanh %283 : vector<8x512xf32>
    %cst_54 = arith.constant 1.000000e+00 : f32
    %285 = vector.broadcast %cst_54 : f32 to vector<8x512xf32>
    %286 = arith.addf %285, %284 : vector<8x512xf32>
    %287 = arith.mulf %276, %286 : vector<8x512xf32>
    %c0_55 = arith.constant 0 : index
    %c0_56 = arith.constant 0 : index
    %288 = vector.load %arg10[%c0_55, %c0_56] : memref<4x8xf32, #tpu.memory_space<vmem>>, vector<4x8xf32>
    %cst_57 = arith.constant dense<0.000000e+00> : vector<4x512xf32>
    %289 = tpu.matmul %288, %287, %cst_57 {dimension_numbers = #tpu.dot_dimension_numbers<[1], [0], [0], [1], [0, 0, 1, 1], [], []>} : vector<4x8xf32>, vector<8x512xf32>, vector<4x512xf32> -> vector<4x512xf32>
    %290 = vector.extract_strided_slice %2 {offsets = [64, 0], sizes = [4, 1], strides = [1, 1]} : vector<68x1xf32> to vector<4x1xf32>
    %291 = vector.broadcast %290 : vector<4x1xf32> to vector<4x512xf32>
    %292 = arith.addf %289, %291 : vector<4x512xf32>
    %293 = arith.addf %174, %292 : vector<4x512xf32>
    %c0_58 = arith.constant 0 : index
    %c0_59 = arith.constant 0 : index
    %294 = vector.load %arg11[%c0_58, %c0_59] : memref<4x512xf32, #tpu.memory_space<vmem>>, vector<4x512xf32>
    tpu.vector_store %arg11[%c0_58, %c0_59], %293 {strides = array<i32>} : memref<4x512xf32, #tpu.memory_space<vmem>>, vector<4x512xf32>,
    return
  }
  func.func @transform_0(%arg0: i32) -> (i32, i32) {
    %c0_i32 = arith.constant 0 : i32
    %c0_i32_0 = arith.constant 0 : i32
    return %c0_i32, %arg0 : i32, i32
  }
  func.func @transform_1(%arg0: i32) -> (i32, i32) {
    %c0_i32 = arith.constant 0 : i32
    %c0_i32_0 = arith.constant 0 : i32
    %c0_i32_1 = arith.constant 0 : i32
    return %c0_i32, %c0_i32_0 : i32, i32
  }
  func.func @transform_2(%arg0: i32) -> (i32, i32) {
    %c0_i32 = arith.constant 0 : i32
    %c0_i32_0 = arith.constant 0 : i32
    %c0_i32_1 = arith.constant 0 : i32
    return %c0_i32, %c0_i32_0 : i32, i32
  }
  func.func @transform_3(%arg0: i32) -> (i32, i32) {
    %c0_i32 = arith.constant 0 : i32
    %c0_i32_0 = arith.constant 0 : i32
    %c0_i32_1 = arith.constant 0 : i32
    return %c0_i32, %c0_i32_0 : i32, i32
  }
  func.func @transform_4(%arg0: i32) -> (i32, i32) {
    %c0_i32 = arith.constant 0 : i32
    %c0_i32_0 = arith.constant 0 : i32
    %c0_i32_1 = arith.constant 0 : i32
    return %c0_i32, %c0_i32_0 : i32, i32
  }
  func.func @transform_5(%arg0: i32) -> (i32, i32) {
    %c0_i32 = arith.constant 0 : i32
    %c0_i32_0 = arith.constant 0 : i32
    %c0_i32_1 = arith.constant 0 : i32
    return %c0_i32, %c0_i32_0 : i32, i32
  }
  func.func @transform_6(%arg0: i32) -> (i32, i32) {
    %c0_i32 = arith.constant 0 : i32
    %c0_i32_0 = arith.constant 0 : i32
    %c0_i32_1 = arith.constant 0 : i32
    return %c0_i32, %c0_i32_0 : i32, i32
  }
  func.func @transform_7(%arg0: i32) -> (i32, i32) {
    %c0_i32 = arith.constant 0 : i32
    %c0_i32_0 = arith.constant 0 : i32
    %c0_i32_1 = arith.constant 0 : i32
    return %c0_i32, %c0_i32_0 : i32, i32
  }
  func.func @transform_8(%arg0: i32) -> (i32, i32) {
    %c0_i32 = arith.constant 0 : i32
    %c0_i32_0 = arith.constant 0 : i32
    %c0_i32_1 = arith.constant 0 : i32
    return %c0_i32, %c0_i32_0 : i32, i32
  }
  func.func @transform_9(%arg0: i32) -> (i32, i32) {
    %c0_i32 = arith.constant 0 : i32
    %c0_i32_0 = arith.constant 0 : i32
    %c0_i32_1 = arith.constant 0 : i32
    return %c0_i32, %c0_i32_0 : i32, i32
  }
  func.func @transform_10(%arg0: i32) -> (i32, i32) {
    %c0_i32 = arith.constant 0 : i32
    %c0_i32_0 = arith.constant 0 : i32
    return %c0_i32, %arg0 : i32, i32
  }
}

</mosaic_0001>

<bundles_post_ra>
// kernel: tpu_custom_call.1
= control target key start
LH: loop header
LB: loop body
LE: loop exit
PB: predicated region body
PF: predicated region fallthrough
CT: control target
= control target key end

     0   :  { %v3809_v1 = vmov 0   ;;  %s3792_s0 = inlined_call_operand.vmem [shape: f32[4,512], index: 0, kind: input, shape index: {}]   ;;  %s3793_s1 = inlined_call_operand.vmem [shape: f32[9,512], index: 1, kind: input, shape index: {}]   ;;  %s3794_s2 = inlined_call_operand.vmem [shape: f32[68,1], index: 2, kind: input, shape index: {}]   ;;  %s3795_s3 = inlined_call_operand.vmem [shape: f32[4,4], index: 3, kind: input, shape index: {}]   ;;  %s3796_s4 = inlined_call_operand.vmem [shape: f32[12,4], index: 4, kind: input, shape index: {}]   ;;  %s3797_s5 = inlined_call_operand.vmem [shape: f32[12,9], index: 5, kind: input, shape index: {}]   ;;  %s3798_s6 = inlined_call_operand.vmem [shape: f32[4,4], index: 6, kind: input, shape index: {}]   ;;  %s3799_s7 = inlined_call_operand.vmem [shape: f32[8,4], index: 7, kind: input, shape index: {}]   ;;  %s3800_s8 = inlined_call_operand.vmem [shape: f32[8,9], index: 8, kind: input, shape index: {}]   ;;  %s3801_s9 = inlined_call_operand.vmem [shape: f32[4,8], index: 9, kind: input, shape index: {}]   ;;  %s3802_s10 = inlined_call_operand.hbm [shape: f32[4,512], index: 10, kind: output, shape index: {}]  }
   0x1   :  { %v46_v0 = vld [vmem:[%s3794_s2] sm:$0xff]  ;;  %2346 = vset.pattern.permute.xlu0 %v3809_v1  ;;  %2347 = vset.pattern.permute.xlu1 %v3809_v1 }
   0x2   :  { %15 = vsyncpa [#allocation3], 0  ;;  %165 = vperm.xlu0 %2346, %v46_v0   ;;  %v47_v2 = vld [vmem:[%s3794_s2 + $0x8] sm:$0xff]  ;;  %v3803_v3 = vmov 0.0   ;;  %v372_v4 = vld [vmem:[%s3797_s5] sm:$0xff]  ;;  %v3821_v5 = vmov 4  }
   0x3   :  { %282 = vmatprep.mubr.f32.mxu0 %v3803_v3  ;;  %359 = vmatprep.mubr.f32.mxu1 %v3803_v3  ;;  %v3817_v6 = vmov 1   ;;  %v2544_v7 = vld [vmem:[%s3792_s0] sm:$0xff]  ;;  %v2549_v8 = vld [vmem:[%s3792_s0 + $0x8] sm:$0xff]  ;;  %v3813_v9 = vmov 3   ;;  %v3819_v10 = vmov 2   ;;  %vm61_vm0 = vcmask 1043456  }
   0x4   :  { %420 = vperm.xlu1 %2347, %v372_v4   ;;  %v57_v11 = vcombine.high %v2544_v7, %v2544_v7  ;;  %v58_v12 = vcombine.high %v2549_v8, %v2549_v8  ;;  %v62_v13 = vsel %vm61_vm0, %v2544_v7, 0.0  ;;  %v3807_v15 = vmov 6   ;;  %v49_v21 = vld [vmem:[%s3794_s2 + $0x18] sm:$0xff]  ;;  %v48_v34 = vld [vmem:[%s3794_s2 + $0x10] sm:$0xff]  ;;  %s2462_s11 = smov 17   ;;  %s2464_s12 = smov 16  }
   0x5   :  { %v3811_v16 = vmov 5   ;;  %v76_v17 = vsel %vm61_vm0, %v2549_v8, 0.0  ;;  %v63_v19 = vrot.slane %v62_v13, 4  ;;  %v3815_v24 = vmov 7   ;;  %s2465_s13 = smov 15   ;;  %s2466_s14 = smov 111  }
   0x6   :  { %191 = vperm.xlu0 %2346, %v47_v2   ;;  %v69_v14 = vsel %vm61_vm0, %v57_v11, 0.0  ;;  %v83_v18 = vsel %vm61_vm0, %v58_v12, 0.0  ;;  %v77_v22 = vrot.slane %v76_v17, 4  ;;  %v3805_v29 = vmov 8   ;;  %s2467_s15 = smov 1   ;;  %s2468_s16 = smov 127  }
   0x7   :  { %v70_v20 = vrot.slane %v69_v14, 4  ;;  %v84_v23 = vrot.slane %v83_v18, 4  ;;  %v64_v25 = vadd.f32 %v63_v19, %v62_v13  ;;  %vm203_vm1 = vcmask 31744   ;;  %s2469_s17 = smov 113  }
   0x8   :  { %2348 = vset.pattern.permute.xlu1 %v3821_v5  ;;  %v78_v27 = vadd.f32 %v77_v22, %v76_v17  ;;  %vm1007_vm10 = vcmask 1047556   ;;  %vm1102_vm11 = vcmask 27648   ;;  %vm2121_vm12 = vcmask 64512  }
   0x9   :  { %376 = vperm.xlu1 %2348, %v372_v4   ;;  %v71_v26 = vadd.f32 %v70_v20, %v69_v14  ;;  %v85_v28 = vadd.f32 %v84_v23, %v83_v18  ;;  %v65_v30 = vrot.slane %v64_v25, 2 }
   0xa   :  { %2349 = vset.pattern.permute.xlu0 %v3817_v6  ;;  %v79_v32 = vrot.slane %v78_v27, 2 }
   0xb   :  { %493 = vperm.xlu0 %2349, %v372_v4   ;;  %v72_v31 = vrot.slane %v71_v26, 2  ;;  %v86_v33 = vrot.slane %v85_v28, 2  ;;  %v66_v35 = vadd.f32 %v65_v30, %v64_v25 }
   0xc   :  { %v80_v37 = vadd.f32 %v79_v32, %v78_v27 }
   0xd   :  { %2350 = vset.pattern.permute.xlu1 %v3819_v10  ;;  %v73_v36 = vadd.f32 %v72_v31, %v71_v26  ;;  %v87_v38 = vadd.f32 %v86_v33, %v85_v28  ;;  %v67_v39 = vrot.slane %v66_v35, 1 }
   0xe   :  { %566 = vperm.xlu1 %2350, %v372_v4   ;;  %v81_v41 = vrot.slane %v80_v37, 1 }
   0xf   :  { %2351 = vset.pattern.permute.xlu0 %v3813_v9  ;;  %v74_v40 = vrot.slane %v73_v36, 1  ;;  %v88_v42 = vrot.slane %v87_v38, 1  ;;  %v68_v43 = vadd.f32 %v67_v39, %v66_v35 }
  0x10   :  { %639 = vperm.xlu0 %2351, %v372_v4   ;;  %v82_v45 = vadd.f32 %v81_v41, %v80_v37 }
  0x11   :  { %v75_v44 = vadd.f32 %v74_v40, %v73_v36  ;;  %v89_v46 = vadd.f32 %v88_v42, %v87_v38  ;;  %v91_v47 = vmul.f32 0.25, %v68_v43  ;;  %v2460_v42 = vmov 839922192  }
  0x12   :  { %2352 = vset.pattern.permute.xlu1 %v3811_v16  ;;  %v93_v49 = vmul.f32 0.25, %v82_v45  ;;  %v168_v43 = vunpack.c.l.s4 %v2460_v42 }
  0x13   :  { %712 = vperm.xlu1 %2352, %v372_v4   ;;  %v92_v48 = vmul.f32 0.25, %v75_v44  ;;  %v94_v50 = vmul.f32 0.25, %v89_v46  ;;  %v170_v44 = vlaneseq }
  0x14   :  { %2353 = vset.pattern.permute.xlu0 %v3807_v15 }
  0x15   :  { %785 = vperm.xlu0 %2353, %v372_v4   ;;  %v99_v51 = vcombine.low %v91_v47, %v92_v48  ;;  %v100_v52 = vcombine.low %v93_v49, %v94_v50  ;;  %v2461_v47 = vmov 1985246804   ;;  %v169_v50 = vunpack.c.0.s8 %v168_v43 }
  0x16   :  { %v178_v48 = vunpack.c.l.s4 %v2461_v47 }
  0x17   :  { %2357 = vset.pattern.permute.xlu1 %v3809_v1  ;;  %v103_v53 = vsub.f32 %v2544_v7, %v99_v51  ;;  %v104_v54 = vsub.f32 %v2549_v8, %v100_v52  ;;  %v2582_v51 = vshrl.u32 %v170_v44, 7 }
  0x18   :  { %980 = vperm.xlu1 %2357, %v49_v21   ;;  %v179_v52 = vunpack.c.0.s8 %v178_v48 }
  0x19   :  { %2354 = vset.pattern.permute.xlu0 %v3815_v24  ;;  %v105_v55 = vmul.f32 %v103_v53, %v103_v53  ;;  %v106_v56 = vmul.f32 %v104_v54, %v104_v54  ;;  %v802_v15 = vsub.s32 6, %v2582_v51 }
  0x1a   :  { %858 = vperm.xlu0 %2354, %v372_v4  }
  0x1b   :  { %v109_v57 = vcombine.high %v105_v55, %v105_v55  ;;  %v110_v58 = vcombine.high %v106_v56, %v106_v56  ;;  %v113_v59 = vsel %vm61_vm0, %v105_v55, 0.0  ;;  %v127_v61 = vsel %vm61_vm0, %v106_v56, 0.0 }
  0x1c   :  { %v114_v62 = vrot.slane %v113_v59, 4  ;;  %v128_v2 = vrot.slane %v127_v61, 4 }
  0x1d   :  { %v120_v60 = vsel %vm61_vm0, %v109_v57, 0.0  ;;  %v134_v63 = vsel %vm61_vm0, %v110_v58, 0.0  ;;  %v2585_v57 = vsub.s32 %v169_v50, %v2582_v51  ;;  %v2588_v58 = vsub.s32 %v179_v52, %v2582_v51 }
  0x1e   :  { %2355 = vset.pattern.permute.xlu0 %v3805_v29  ;;  %v121_v0 = vrot.slane %v120_v60, 4  ;;  %v115_v11 = vadd.f32 %v114_v62, %v113_v59  ;;  %v129_v12 = vadd.f32 %v128_v2, %v127_v61 }
  0x1f   :  { %931 = vperm.xlu0 %2355, %v372_v4   ;;  %v135_v4 = vrot.slane %v134_v63, 4  ;;  %3863 = vst [vmem:[#allocation5_spill] sm:$0xff] %v2585_v57  ;;  %3864 = vst [vmem:[#allocation6_spill] sm:$0xff] %v2588_v58 }
  0x20   :  { %v122_v7 = vadd.f32 %v121_v0, %v120_v60  ;;  %v116_v13 = vrot.slane %v115_v11, 2  ;;  %v130_v17 = vrot.slane %v129_v12, 2 }
  0x21   :  { %v136_v8 = vadd.f32 %v135_v4, %v134_v63 }
  0x22   :  { %v123_v14 = vrot.slane %v122_v7, 2  ;;  %v117_v19 = vadd.f32 %v116_v13, %v115_v11  ;;  %v131_v21 = vadd.f32 %v130_v17, %v129_v12 }
  0x23   :  { %2356 = vset.pattern.permute.xlu0 %v3809_v1  ;;  %v137_v18 = vrot.slane %v136_v8, 2 }
  0x24   :  { %196 = vperm.xlu0 %2356, %v48_v34   ;;  %v124_v20 = vadd.f32 %v123_v14, %v122_v7  ;;  %v118_v23 = vrot.slane %v117_v19, 1  ;;  %v132_v26 = vrot.slane %v131_v21, 1 }
  0x25   :  { %v138_v22 = vadd.f32 %v137_v18, %v136_v8  ;;  %v187_v8 = vld [vmem:[%s3796_s4] sm:$0xff] }
  0x26   :  { %v125_v25 = vrot.slane %v124_v20, 1  ;;  %v119_v28 = vadd.f32 %v118_v23, %v117_v19  ;;  %v133_v31 = vadd.f32 %v132_v26, %v131_v21 }
  0x27   :  { %v139_v27 = vrot.slane %v138_v22, 1 }
  0x28   :  { %v126_v30 = vadd.f32 %v125_v25, %v124_v20  ;;  %v141_v33 = vmul.f32 0.25, %v119_v28  ;;  %v143_v35 = vmul.f32 0.25, %v133_v31 }
  0x29   :  { %v140_v32 = vadd.f32 %v139_v27, %v138_v22 }
  0x2a   :  { %v142_v34 = vmul.f32 0.25, %v126_v30  ;;  %v145_v37 = vadd.f32 1e-05, %v141_v33  ;;  %v147_v39 = vadd.f32 1e-05, %v143_v35 }
  0x2b   :  { %v144_v36 = vmul.f32 0.25, %v140_v32 }
  0x2c   :  { %v146_v38 = vadd.f32 1e-05, %v142_v34  ;;  %2380 = vrsqrt.f32 %v145_v37 }
  0x2d   :  { %v148_v40 = vadd.f32 1e-05, %v144_v36 }
  0x2e   :  { %2382 = vrsqrt.f32 %v146_v38 }
  0x2f   :  { %2384 = vrsqrt.f32 %v147_v39 }
  0x30   :  { %2386 = vrsqrt.f32 %v148_v40 }
  0x36   :  { %v2381_v41 = vpop.eup %2380 }
  0x38   :  { %v2383_v45 = vpop.eup %2382 }
  0x39   :  { %v2385_v46 = vpop.eup %2384  ;;  %v157_v55 = vcombine.low %v2381_v41, %v2383_v45 }
  0x3a   :  { %v2387_v49 = vpop.eup %2386 }
  0x3b   :  { %v158_v56 = vcombine.low %v2385_v46, %v2387_v49  ;;  %v161_v59 = vmul.f32 %v157_v55, %v103_v53  ;;  %v188_v53 = vld [vmem:[%s3796_s4 + $0x8] sm:$0xf]  ;;  %s2463_s4 = smov 112  }
  0x3d   :  { %v162_v60 = vmul.f32 %v158_v56, %v104_v54 }
  0x81   :  { %v166_v61 = vpop.permute.xlu0 %165 }
  0x82   :  { %v173_v62 = vrot.slane %v166_v61, %v2585_v57  ;;  %v183_v63 = vrot.slane %v166_v61, %v2588_v58 }
  0x83   :  { %v2693_v31 = vpop.permute.xlu1 %420 }
  0x84   :  { %v175_v0 = vmul.f32 %v173_v62, %v161_v59  ;;  %v176_v2 = vmul.f32 %v173_v62, %v162_v60  ;;  %v2738_v62 = vand.u32 127, %v170_v44 }
  0x85   :  { %v192_v54 = vpop.permute.xlu0 %191 }
  0x86   :  { %v185_v4 = vadd.f32 %v183_v63, %v175_v0  ;;  %v186_v11 = vadd.f32 %v183_v63, %v176_v2  ;;  %v437_v63 = vsub.s32 0, %v2582_v51  ;;  %v39_v2 = vld [vmem:[%s3793_s1 + $0x8] sm:$0xff]  ;;  %vm410_vm2 = vcmp.lt.s32.totalorder %v2738_v62, 17 }
  0x87   :  { %vm483_vm3 = vcmp.lt.s32.totalorder %v2738_v62, 16  ;;  %vm556_vm4 = vcmp.lt.s32.totalorder %v2738_v62, 15  ;;  %vm629_vm5 = vcmp.lt.s32.totalorder %v2738_v62, 1  ;;  %vm702_vm6 = vcmp.lt.s32.totalorder %v2738_v62, 127 }
  0x88   :  { %v201_v7 = vcombine.high %v185_v4, %v185_v4  ;;  %v202_v12 = vcombine.high %v186_v11, %v186_v11  ;;  %v377_v33 = vpop.permute.xlu1 %376  ;;  %vm775_vm7 = vcmp.lt.s32.totalorder %v2738_v62, 113  ;;  %vm848_vm8 = vcmp.lt.s32.totalorder %v2738_v62, 112 }
  0x89   :  { %vm921_vm9 = vcmp.lt.s32.totalorder %v2738_v62, 111  ;;  %v2425_v62 = vld [vmem:[%s3793_s1 + $0x38] ss:$0 sm:$0xff] }
  0x8a   :  { %2293 = vmatprep.subr.msk.mxu0 %vm61_vm0, %v201_v7  ;;  %2297 = vmatprep.subr.msk.mxu1 %vm61_vm0, %v202_v12  ;;  %v2689_v28 = vpop.permute.xlu0 %493  ;;  %v510_v7 = vsub.s32 1, %v2582_v51 }
  0x8b   :  { %2294 = vmatpush1.msk.msra.mxu0 %vm61_vm0, %v185_v4  ;;  %2298 = vmatpush1.msk.msra.mxu1 %vm61_vm0, %v186_v11  ;;  %v2751_v11 = vld [vmem:[%s3793_s1 + $0x10] sm:$0xff] }
  0x8c   :  { %2295 = vmatmul.mubr.msk.f32.vlgmr.msra.gmra.mrb[0].mxu0 %vm203_vm1, %v187_v8  ;;  %2299 = vmatmul.mubr.msk.f32.vlgmr.msra.gmra.mrb[0].mxu1 %vm203_vm1, %v187_v8  ;;  %v38_v8 = vld [vmem:[%s3793_s1] sm:$0xff]  ;;  %v2784_v29 = vrot.slane %v2751_v11, %v437_v63 }
  0x8d   :  { %288 = vmatprep.mubr.f32.mxu0 %v3803_v3  ;;  %365 = vmatprep.mubr.f32.mxu1 %v3803_v3  ;;  %v2697_v34 = vpop.permute.xlu1 %566  ;;  %v2794_v9 = vrot.slane %v38_v8, %v510_v7  ;;  %v2818_v57 = vrot.slane %v38_v8, %v802_v15 }
  0x8e   :  { %3878 = vst [vmem:[#allocation20_spill] sm:$0xff] %v2784_v29 }
  0x8f   :  { %v2691_v30 = vpop.permute.xlu0 %639  ;;  %3879 = vst [vmem:[#allocation21_spill] sm:$0xff] %v2794_v9  ;;  %3881 = vst [vmem:[#allocation23_spill] sm:$0xff] %v2818_v57 }
  0x90   :  { %2296 = vmatmul.mubr.msk.f32.gmra.mrb[2].mxu0 %vm203_vm1, %v188_v53  ;;  %2300 = vmatmul.mubr.msk.f32.gmra.mrb[2].mxu1 %vm203_vm1, %v188_v53  ;;  %v583_v53 = vsub.s32 2, %v2582_v51 }
  0x91   :  { %1181 = vmatprep.mubr.f32.mxu1 %v3803_v3 }
  0x92   :  { %v2701_v36 = vpop.permute.xlu1 %712 }
  0x94   :  { %v2695_v32 = vpop.permute.xlu0 %785 }
  0x97   :  { %v981_v38 = vpop.permute.xlu1 %980 }
  0x98   :  { %v2746_v4 = vrot.slane %v981_v38, 4 }
  0x99   :  { %v2699_v35 = vpop.permute.xlu0 %858 }
  0x9a   :  { %3869 = vst [vmem:[#allocation11_spill] sm:$0xff] %v2699_v35  ;;  %3875 = vst [vmem:[#allocation17_spill] sm:$0xff] %v2746_v4  ;;  %v2835_v4 = vrot.slane %v2751_v11, %v510_v7 }
  0x9e   :  { %v2703_v37 = vpop.permute.xlu0 %931 }
  0x9f   :  { %3870 = vst [vmem:[#allocation12_spill] sm:$0xff] %v2703_v37  ;;  %v2837_v37 = vrot.slane %v38_v8, %v583_v53 }
  0xa3   :  { %v2705_v39 = vpop.permute.xlu0 %196 }
  0xa4   :  { %3871 = vst [vmem:[#allocation13_spill] sm:$0xff] %v2705_v39  ;;  %v875_v39 = vsub.s32 7, %v2582_v51 }
 0x15f   :  { %v284_v13 = vpop.f32.mrb[0].mxu0  ;;  %v361_v14 = vpop.f32.mrb[0].mxu1 }
 0x160   :  { %v2609_v17 = vadd.f32 %v284_v13, %v192_v54  ;;  %v2611_v18 = vadd.f32 %v361_v14, %v192_v54  ;;  %v286_v19 = vpop.f32.mrb[1].mxu0  ;;  %v363_v20 = vpop.f32.mrb[1].mxu1  ;;  %v2766_v13 = vrot.slane %v39_v2, %v437_v63  ;;  %v2771_v14 = vld [vmem:[%s3793_s1 + $0x18] sm:$0xff] }
 0x161   :  { %v2629_v21 = vadd.f32 %v286_v19, %v192_v54  ;;  %v2643_v27 = vadd.f32 %v363_v20, %v192_v54  ;;  %v729_v20 = vsub.s32 5, %v2582_v51 }
 0x162   :  { %400 = vrot.lane.b32.xlu0 %v2611_v18, %s2462_s11  ;;  %392 = vrot.lane.b32.xlu1 %v2609_v17, %s2462_s11  ;;  %v2755_v44 = vmul.f32 %v377_v33, %v2609_v17  ;;  %v2764_v54 = vmul.f32 %v377_v33, %v2611_v18  ;;  %3876 = vst [vmem:[#allocation18_spill] sm:$0xff] %v2766_v13 }
 0x163   :  { %v2631_v22 = vpop.f32.mrb[2].mxu0  ;;  %v2633_v23 = vpop.f32.mrb[2].mxu1  ;;  %v385_v3 = vmul.f32 %v377_v33, %v2629_v21  ;;  %v2808_v6 = vrot.slane %v38_v8, %v729_v20 }
 0x164   :  { %3865 = vst [vmem:[#allocation7_spill] sm:$0xff] %v2631_v22  ;;  %3866 = vst [vmem:[#allocation8_spill] sm:$0xff] %v2633_v23  ;;  %v2639_v25 = vpop.f32.mrb[3].mxu0  ;;  %v2641_v26 = vpop.f32.mrb[3].mxu1  ;;  %v2822_v22 = vrot.slane %v38_v8, %v437_v63  ;;  %v2825_v23 = vrot.slane %v2771_v14, %v437_v63 }
 0x165   :  { %3867 = vst [vmem:[#allocation9_spill] sm:$0xff] %v2639_v25  ;;  %3868 = vst [vmem:[#allocation10_spill] sm:$0xff] %v2641_v26  ;;  %v2820_v26 = vrot.slane %v39_v2, %v802_v15 }
 0x166   :  { %832 = vrot.lane.b32.xlu0 %v2609_v17, %s2463_s4  ;;  %467 = vrot.lane.b32.xlu1 %v2609_v17, %s2464_s12  ;;  %3883 = vst [vmem:[#allocation25_spill] sm:$0xff] %v2822_v22  ;;  %3884 = vst [vmem:[#allocation26_spill] sm:$0xff] %v2825_v23 }
 0x167   :  { %3882 = vst [vmem:[#allocation24_spill] sm:$0xff] %v2820_v26 }
 0x16a   :  { %840 = vrot.lane.b32.xlu0 %v2611_v18, %s2463_s4  ;;  %540 = vrot.lane.b32.xlu1 %v2609_v17, %s2465_s13 }
 0x16e   :  { %905 = vrot.lane.b32.xlu0 %v2609_v17, %s2466_s14  ;;  %475 = vrot.lane.b32.xlu1 %v2611_v18, %s2464_s12 }
 0x172   :  { %396 = vrot.lane.b32.xlu0 %v2629_v21, %s2462_s11  ;;  %613 = vrot.lane.b32.xlu1 %v2609_v17, %s2467_s15 }
 0x176   :  { %479 = vrot.lane.b32.xlu0 %v2643_v27, %s2464_s12  ;;  %548 = vrot.lane.b32.xlu1 %v2611_v18, %s2465_s13 }
 0x17a   :  { %544 = vrot.lane.b32.xlu0 %v2629_v21, %s2465_s13  ;;  %686 = vrot.lane.b32.xlu1 %v2609_v17, %s2468_s16 }
 0x17e   :  { %617 = vrot.lane.b32.xlu0 %v2629_v21, %s2467_s15  ;;  %694 = vrot.lane.b32.xlu1 %v2611_v18, %s2468_s16 }
 0x182   :  { %690 = vrot.lane.b32.xlu0 %v2629_v21, %s2468_s16  ;;  %621 = vrot.lane.b32.xlu1 %v2611_v18, %s2467_s15 }
 0x186   :  { %763 = vrot.lane.b32.xlu0 %v2629_v21, %s2469_s17  ;;  %759 = vrot.lane.b32.xlu1 %v2609_v17, %s2469_s17  ;;  %v656_v17 = vsub.s32 3, %v2582_v51  ;;  %v2844_v51 = vrot.slane %v2771_v14, %v583_v53 }
 0x188   :  { %v2806_v24 = vrot.slane %v39_v2, %v656_v17  ;;  %v2816_v58 = vrot.slane %v2751_v11, %v656_v17  ;;  %3886 = vst [vmem:[#allocation28_spill] sm:$0xff] %v2844_v51  ;;  %v2862_v51 = vrot.slane %v2771_v14, %v729_v20 }
 0x18a   :  { %913 = vrot.lane.b32.xlu0 %v2611_v18, %s2466_s14  ;;  %767 = vrot.lane.b32.xlu1 %v2611_v18, %s2469_s17  ;;  %v2781_v18 = vmul.f32 %v377_v33, %v2643_v27  ;;  %v2803_v33 = vrot.slane %v2751_v11, %v583_v53  ;;  %3888 = vst [vmem:[#allocation30_spill] sm:$0xff] %v2862_v51 }
 0x18c   :  { %3877 = vst [vmem:[#allocation19_spill] sm:$0xff] %v2781_v18 }
 0x18e   :  { %917 = vrot.lane.b32.xlu0 %v2643_v27, %s2466_s14  ;;  %404 = vrot.lane.b32.xlu1 %v2643_v27, %s2462_s11 }
 0x192   :  { %471 = vrot.lane.b32.xlu1 %v2629_v21, %s2464_s12 }
 0x196   :  { %552 = vrot.lane.b32.xlu1 %v2643_v27, %s2465_s13 }
 0x19a   :  { %625 = vrot.lane.b32.xlu1 %v2643_v27, %s2467_s15 }
 0x19e   :  { %698 = vrot.lane.b32.xlu1 %v2643_v27, %s2468_s16 }
 0x1a2   :  { %836 = vrot.lane.b32.xlu1 %v2629_v21, %s2463_s4 }
 0x1a6   :  { %771 = vrot.lane.b32.xlu1 %v2643_v27, %s2469_s17 }
 0x1aa   :  { %909 = vrot.lane.b32.xlu1 %v2629_v21, %s2466_s14  ;;  %v2797_v21 = vrot.slane %v2771_v14, %v510_v7 }
 0x1ac   :  { %3880 = vst [vmem:[#allocation22_spill] sm:$0xff] %v2797_v21 }
 0x1ae   :  { %844 = vrot.lane.b32.xlu1 %v2643_v27, %s2463_s4  ;;  %v2800_v27 = vrot.slane %v39_v2, %v583_v53 }
 0x1d4   :  { %v2707_v40 = vpop.permute.xlu0 %400  ;;  %v2709_v41 = vpop.permute.xlu1 %392 }
 0x1d8   :  { %v2711_v42 = vpop.permute.xlu0 %832  ;;  %v2713_v43 = vpop.permute.xlu1 %467 }
 0x1d9   :  { %3872 = vst [vmem:[#allocation14_spill] sm:$0xff] %v2711_v42 }
 0x1dc   :  { %v2715_v45 = vpop.permute.xlu1 %540  ;;  %v2717_v46 = vpop.permute.xlu0 %840 }
 0x1dd   :  { %3873 = vst [vmem:[#allocation15_spill] sm:$0xff] %v2717_v46  ;;  %v2857_v46 = vrot.slane %v2751_v11, %v729_v20 }
 0x1df   :  { %3887 = vst [vmem:[#allocation29_spill] sm:$0xff] %v2857_v46 }
 0x1e0   :  { %v2719_v47 = vpop.permute.xlu1 %475  ;;  %v2721_v48 = vpop.permute.xlu0 %905 }
 0x1e1   :  { %3874 = vst [vmem:[#allocation16_spill] sm:$0xff] %v2721_v48  ;;  %v2846_v48 = vrot.slane %v38_v8, %v656_v17 }
 0x1e4   :  { %v2723_v49 = vpop.permute.xlu1 %613  ;;  %v397_v52 = vpop.permute.xlu0 %396 }
 0x1e5   :  { %v413_v1 = vsel %vm410_vm2, %v397_v52, %v2707_v40  ;;  %v415_v16 = vsel %vm410_vm2, %v2709_v41, %v397_v52  ;;  %v2810_v52 = vrot.slane %v39_v2, %v729_v20 }
 0x1e6   :  { %v428_v5 = vmul.f32 %v2693_v31, %v415_v16  ;;  %v429_v12 = vmul.f32 %v2693_v31, %v413_v1  ;;  %v2832_v16 = vrot.slane %v39_v2, %v510_v7 }
 0x1e8   :  { %v2725_v50 = vpop.permute.xlu1 %548  ;;  %v2729_v56 = vpop.permute.xlu0 %479  ;;  %3885 = vst [vmem:[#allocation27_spill] sm:$0xff] %v2832_v16  ;;  %v452_v26 = vmul.f32 %v2766_v13, %v428_v5  ;;  %v453_v7 = vmul.f32 %v2784_v29, %v429_v12  ;;  %v2867_v13 = vrot.slane %v39_v2, %v875_v39  ;;  %v2870_v12 = vrot.slane %v2751_v11, %v802_v15 }
 0x1e9   :  { %v490_v63 = vsel %vm483_vm3, %v2729_v56, %v2713_v43 }
 0x1ea   :  { %v500_v5 = vmul.f32 %v2689_v28, %v490_v63  ;;  %3890 = vst [vmem:[#allocation32_spill] sm:$0xff] %v2870_v12  ;;  %v460_v63 = vadd.f32 %v452_v26, %v385_v3  ;;  %v2891_v29 = vadd.f32 %v453_v7, %v2764_v54 }
 0x1ec   :  { %v2727_v55 = vpop.permute.xlu1 %686  ;;  %v2735_v61 = vpop.permute.xlu0 %544 }
 0x1ed   :  { %v561_v2 = vsel %vm556_vm4, %v2715_v45, %v2735_v61 }
 0x1ee   :  { %v574_v54 = vmul.f32 %v2697_v34, %v561_v2 }
 0x1f0   :  { %v2731_v59 = vpop.permute.xlu1 %694  ;;  %v2774_v19 = vpop.permute.xlu0 %617 }
 0x1f4   :  { %v2733_v60 = vpop.permute.xlu1 %621  ;;  %v691_v25 = vpop.permute.xlu0 %690 }
 0x1f5   :  { %v705_v7 = vsel %vm702_vm6, %v691_v25, %v2731_v59 }
 0x1f8   :  { %v2741_v0 = vpop.permute.xlu1 %759  ;;  %v764_v20 = vpop.permute.xlu0 %763 }
 0x1fc   :  { %v2777_v38 = vpop.permute.xlu1 %767 }
 0x200   :  { %v405_v10 = vpop.permute.xlu1 %404 }
 0x201   :  { %v417_v1 = vsel %vm410_vm2, %v405_v10, %v2709_v41  ;;  %v2849_v41 = vrot.slane %v2771_v14, %v656_v17  ;;  %v2864_v17 = vrot.slane %v38_v8, %v875_v39  ;;  %v559_v8 = vsel %vm556_vm4, %v2735_v61, %v2725_v50 }
 0x202   :  { %v427_v18 = vmul.f32 %v2693_v31, %v417_v1  ;;  %v634_v61 = vsel %vm629_vm5, %v2723_v49, %v2774_v19 }
 0x203   :  { %3889 = vst [vmem:[#allocation31_spill] sm:$0xff] %v2864_v17 }
 0x204   :  { %v472_v35 = vpop.permute.xlu1 %471  ;;  %v451_v3 = vmul.f32 %v2822_v22, %v427_v18 }
 0x205   :  { %v488_v42 = vsel %vm483_vm3, %v2713_v43, %v472_v35  ;;  %v2873_v43 = vrot.slane %v2771_v14, %v802_v15  ;;  %v2888_v15 = vrot.slane %v2751_v11, %v875_v39  ;;  %v411_v11 = vsel %vm410_vm2, %v2707_v40, %v405_v10 }
 0x206   :  { %v501_v53 = vmul.f32 %v2689_v28, %v488_v42  ;;  %v484_v42 = vsel %vm483_vm3, %v2719_v47, %v2729_v56  ;;  %v707_v10 = vsel %vm702_vm6, %v2727_v55, %v691_v25  ;;  %v486_v40 = vsel %vm483_vm3, %v472_v35, %v2719_v47  ;;  %v2936_v47 = vpop.permute.xlu0 %913 }
 0x207   :  { %3891 = vst [vmem:[#allocation33_spill] sm:$0xff] %v2873_v43  ;;  %3892 = vst [vmem:[#allocation34_spill] sm:$0xff] %v2888_v15  ;;  %v2897_v43 = vrot.slane %v2771_v14, %v875_v39  ;;  %v524_v39 = vmul.f32 %v2794_v9, %v500_v5  ;;  %v575_v14 = vmul.f32 %v2697_v34, %v559_v8 }
 0x208   :  { %v553_v1 = vpop.permute.xlu1 %552  ;;  %v525_v26 = vmul.f32 %v2832_v16, %v501_v53  ;;  %v647_v5 = vmul.f32 %v2691_v30, %v634_v61  ;;  %v430_v8 = vmul.f32 %v2693_v31, %v411_v11  ;;  %v780_v35 = vsel %vm775_vm7, %v2741_v0, %v764_v20 }
 0x209   :  { %v563_v56 = vsel %vm556_vm4, %v553_v1, %v2715_v45  ;;  %3893 = vst [vmem:[#allocation35_spill] sm:$0xff] %v2897_v43  ;;  %v503_v45 = vmul.f32 %v2689_v28, %v484_v42  ;;  %v632_v42 = vsel %vm629_vm5, %v2774_v19, %v2733_v60  ;;  %v459_v2 = vadd.f32 %v451_v3, %v2755_v44 }
 0x20a   :  { %v573_v18 = vmul.f32 %v2697_v34, %v563_v56  ;;  %v533_v56 = vadd.f32 %v525_v26, %v460_v63  ;;  %v719_v19 = vmul.f32 %v2701_v36, %v707_v10  ;;  %v720_v31 = vmul.f32 %v2701_v36, %v705_v7 }
 0x20b   :  { %v527_v9 = vmul.f32 %v2797_v21, %v503_v45  ;;  %v502_v11 = vmul.f32 %v2689_v28, %v486_v40  ;;  %v648_v22 = vmul.f32 %v2691_v30, %v632_v42  ;;  %v778_v16 = vsel %vm775_vm7, %v764_v20, %v2777_v38 }
 0x20c   :  { %v626_v53 = vpop.permute.xlu1 %625  ;;  %v597_v44 = vmul.f32 %v2837_v37, %v573_v18  ;;  %v599_v3 = vmul.f32 %v2803_v33, %v575_v14  ;;  %v792_v26 = vmul.f32 %v2695_v32, %v780_v35  ;;  %v454_v45 = vmul.f32 %v2825_v23, %v430_v8 }
 0x20d   :  { %v636_v25 = vsel %vm629_vm5, %v626_v53, %v2723_v49  ;;  %v598_v49 = vmul.f32 %v2800_v27, %v574_v54  ;;  %v557_v28 = vsel %vm556_vm4, %v2725_v50, %v553_v1  ;;  %v671_v54 = vmul.f32 %v2806_v24, %v647_v5 }
 0x20e   :  { %v646_v61 = vmul.f32 %v2691_v30, %v636_v25  ;;  %v532_v10 = vadd.f32 %v524_v39, %v459_v2  ;;  %v743_v20 = vmul.f32 %v2808_v6, %v719_v19  ;;  %v744_v18 = vmul.f32 %v2810_v52, %v720_v31  ;;  %v918_v25 = vpop.permute.xlu0 %917  ;;  %v3894_v2 = vld [vmem:[#allocation19_spill] sm:$0xff]  ;;  %v3896_v19 = vld [vmem:[#allocation14_spill] sm:$0xff] }
 0x20f   :  { %v606_v7 = vadd.f32 %v598_v49, %v533_v56  ;;  %v793_v14 = vmul.f32 %v2695_v32, %v778_v16  ;;  %v526_v42 = vmul.f32 %v2835_v4, %v502_v11  ;;  %v672_v8 = vmul.f32 %v2816_v58, %v648_v22 }
 0x210   :  { %v699_v63 = vpop.permute.xlu1 %698  ;;  %v670_v40 = vmul.f32 %v2846_v48, %v646_v61  ;;  %v576_v35 = vmul.f32 %v2697_v34, %v557_v28  ;;  %v605_v50 = vadd.f32 %v597_v44, %v532_v10  ;;  %v630_v1 = vsel %vm629_vm5, %v2733_v60, %v626_v53  ;;  %v3895_v61 = vld [vmem:[#allocation15_spill] sm:$0xff]  ;;  %v3897_v53 = vld [vmem:[#allocation24_spill] sm:$0xff] }
 0x211   :  { %v816_v5 = vmul.f32 %v2818_v57, %v792_v26  ;;  %v462_v56 = vadd.f32 %v454_v45, %v3894_v2  ;;  %v679_v31 = vadd.f32 %v671_v54, %v606_v7  ;;  %v703_v11 = vsel %vm702_vm6, %v2731_v59, %v699_v63  ;;  %v3898_v28 = vld [vmem:[#allocation16_spill] sm:$0xff]  ;;  %v3900_v10 = vld [vmem:[#allocation11_spill] sm:$0xff] }
 0x212   :  { %v678_v34 = vadd.f32 %v670_v40, %v605_v50  ;;  %v709_v60 = vsel %vm702_vm6, %v699_v63, %v2727_v55  ;;  %v817_v49 = vmul.f32 %v3897_v53, %v793_v14  ;;  %v922_v44 = vsel %vm921_vm9, %v2936_v47, %v918_v25  ;;  %v3899_v7 = vld [vmem:[#allocation28_spill] sm:$0xff] }
 0x213   :  { %v534_v26 = vadd.f32 %v526_v42, %v2891_v29  ;;  %v649_v45 = vmul.f32 %v2691_v30, %v630_v1  ;;  %v928_v54 = vsel %vm921_vm9, %v918_v25, %v3898_v28  ;;  %v600_v59 = vmul.f32 %v3899_v7, %v576_v35  ;;  %v3901_v42 = vld [vmem:[#allocation12_spill] sm:$0xff] }
 0x214   :  { %v837_v39 = vpop.permute.xlu1 %836  ;;  %v721_v14 = vmul.f32 %v2701_v36, %v703_v11  ;;  %v722_v50 = vmul.f32 %v2701_v36, %v709_v60  ;;  %v940_v25 = vmul.f32 %v3901_v42, %v922_v44  ;;  %v535_v35 = vadd.f32 %v527_v9, %v462_v56 }
 0x215   :  { %v851_v16 = vsel %vm848_vm8, %v837_v39, %v3895_v61  ;;  %v853_v22 = vsel %vm848_vm8, %v3896_v19, %v837_v39  ;;  %v751_v1 = vadd.f32 %v743_v20, %v678_v34  ;;  %v752_v39 = vadd.f32 %v744_v18, %v679_v31 }
 0x216   :  { %v865_v40 = vmul.f32 %v3900_v10, %v853_v22  ;;  %v866_v55 = vmul.f32 %v3900_v10, %v851_v16  ;;  %v607_v2 = vadd.f32 %v599_v3, %v534_v26  ;;  %v673_v16 = vmul.f32 %v2849_v41, %v649_v45  ;;  %v3013_v3 = vld [vmem:[%s3793_s1 + $0x20] ss:$0 sm:$0xff] }
 0x217   :  { %v941_v11 = vmul.f32 %v3901_v42, %v928_v54  ;;  %v608_v60 = vadd.f32 %v600_v59, %v535_v35  ;;  %v745_v44 = vmul.f32 %v2857_v46, %v721_v14  ;;  %v746_v9 = vmul.f32 %v2862_v51, %v722_v50 }
 0x218   :  { %v772_v63 = vpop.permute.xlu1 %771  ;;  %v890_v57 = vmul.f32 %v2867_v13, %v866_v55  ;;  %v825_v56 = vadd.f32 %v817_v49, %v752_v39  ;;  %v824_v31 = vadd.f32 %v816_v5, %v751_v1  ;;  %v680_v54 = vadd.f32 %v672_v8, %v607_v2 }
 0x219   :  { %v776_v29 = vsel %vm775_vm7, %v2777_v38, %v772_v63  ;;  %v782_v30 = vsel %vm775_vm7, %v772_v63, %v2741_v0  ;;  %v889_v38 = vmul.f32 %v2864_v17, %v865_v40  ;;  %v681_v45 = vadd.f32 %v673_v16, %v608_v60  ;;  %v3902_v40 = vld [vmem:[#allocation33_spill] sm:$0xff] }
 0x21a   :  { %v794_v22 = vmul.f32 %v2695_v32, %v776_v29  ;;  %v795_v36 = vmul.f32 %v2695_v32, %v782_v30  ;;  %v3018_v32 = vld [vmem:[%s3793_s1 + $0x28] ss:$0 sm:$0xff]  ;;  %v898_v14 = vadd.f32 %v890_v57, %v825_v56  ;;  %v3041_v30 = vld [vmem:[%s3793_s1 + $0x30] ss:$0 sm:$0xff]  ;;  %v3046_v57 = vld [vmem:[%s3793_s1 + $0x38] ss:$0 sm:$0xff] }
 0x21b   :  { %v897_v63 = vadd.f32 %v889_v38, %v824_v31  ;;  %v754_v49 = vadd.f32 %v746_v9, %v681_v45  ;;  %3903 = vst [vmem:[#allocation19_spill] sm:$0xff] %v3041_v30  ;;  %3904 = vst [vmem:[#allocation15_spill] sm:$0xff] %v3046_v57  ;;  %v3905_v16 = vld [vmem:[#allocation17_spill] sm:$0xff]  ;;  %v964_v9 = vmul.f32 %v3041_v30, %v940_v25 }
 0x21c   :  { %v910_v0 = vpop.permute.xlu1 %909  ;;  %v818_v59 = vmul.f32 %v2870_v12, %v794_v22  ;;  %v819_v55 = vmul.f32 %v3902_v40, %v795_v36 }
 0x21d   :  { %v924_v20 = vsel %vm921_vm9, %v910_v0, %v2936_v47  ;;  %v926_v18 = vsel %vm921_vm9, %v3898_v28, %v910_v0  ;;  %v753_v28 = vadd.f32 %v745_v44, %v680_v54 }
 0x21e   :  { %v938_v34 = vmul.f32 %v3901_v42, %v926_v18  ;;  %v939_v26 = vmul.f32 %v3901_v42, %v924_v20  ;;  %v827_v2 = vadd.f32 %v819_v55, %v754_v49  ;;  %v965_v20 = vmul.f32 %v3046_v57, %v941_v11 }
 0x21f   :  { %v826_v39 = vadd.f32 %v818_v59, %v753_v28 }
 0x220   :  { %v962_v47 = vmul.f32 %v3013_v3, %v938_v34  ;;  %v963_v50 = vmul.f32 %v3018_v32, %v939_v26  ;;  %v845_v29 = vpop.permute.xlu1 %844 }
 0x221   :  { %v849_v5 = vsel %vm848_vm8, %v3895_v61, %v845_v29  ;;  %v855_v8 = vsel %vm848_vm8, %v845_v29, %v3896_v19  ;;  %v3906_v19 = vld [vmem:[#allocation13_spill] sm:$0xff] }
 0x222   :  { %v970_v42 = vadd.f32 %v962_v47, %v897_v63  ;;  %v971_v35 = vadd.f32 %v963_v50, %v898_v14  ;;  %v867_v1 = vmul.f32 %v3900_v10, %v849_v5  ;;  %v868_v61 = vmul.f32 %v3900_v10, %v855_v8 }
 0x223   :  { %v3907_v22 = vrot.slane %v3906_v19, 4 }
 0x224   :  { %v891_v0 = vmul.f32 %v2888_v15, %v867_v1  ;;  %v892_v44 = vmul.f32 %v2897_v43, %v868_v61  ;;  %v3908_v1 = vmov 4   ;;  %v50_v61 = vld [vmem:[%s3794_s2 + $0x20] sm:$0xff] }
 0x225   :  { %v984_v36 = vsel %vm61_vm0, %v3907_v22, %v3905_v16 }
 0x226   :  { %v3054_v60 = vadd.f32 %v984_v36, %v970_v42  ;;  %v3056_v38 = vadd.f32 %v984_v36, %v971_v35  ;;  %v899_v10 = vadd.f32 %v891_v0, %v826_v39  ;;  %v900_v18 = vadd.f32 %v892_v44, %v827_v2  ;;  %v373_v35 = vld [vmem:[%s3797_s5 + $0x8] sm:$0xf]  ;;  %v3913_v44 = vld [vmem:[#allocation7_spill] sm:$0xff] }
 0x227   :  { %v3909_v39 = vmov 2   ;;  %v3910_v2 = vld [vmem:[#allocation8_spill] sm:$0xff]  ;;  %v3912_v0 = vmov 7  }
 0x228   :  { %v996_v56 = vmul.f32 %v3054_v60, %v3054_v60  ;;  %v997_v31 = vmul.f32 %v3056_v38, %v3056_v38  ;;  %v972_v34 = vadd.f32 %v964_v9, %v899_v10  ;;  %v973_v26 = vadd.f32 %v965_v20, %v900_v18  ;;  %v3914_v20 = vld [vmem:[#allocation10_spill] sm:$0xff] }
 0x229   :  { %v3092_v22 = vadd.f32 %v3910_v2, %v3906_v19  ;;  %v3100_v9 = vadd.f32 %v3913_v44, %v3906_v19  ;;  %v3104_v10 = vadd.f32 %v3914_v20, %v3906_v19  ;;  %v3915_v18 = vmov 3  }
 0x22a   :  { %v1008_v45 = vsel %vm1007_vm10, %v996_v56, 0.0  ;;  %v1009_v54 = vsel %vm1007_vm10, %v997_v31, 0.0  ;;  %v3068_v55 = vadd.f32 %v984_v36, %v972_v34  ;;  %v3070_v25 = vadd.f32 %v984_v36, %v973_v26 }
 0x22b   :  { %v1010_v59 = vadd.f32 %v1009_v54, %v1008_v45  ;;  %v998_v5 = vsel %vm61_vm0, %v996_v56, 0.0  ;;  %v999_v8 = vsel %vm61_vm0, %v997_v31, 0.0  ;;  %v3911_v36 = vmov 1   ;;  %v3916_v56 = vld [vmem:[#allocation9_spill] sm:$0xff] }
 0x22c   :  { %v1188_v11 = vmul.f32 %v3068_v55, %v3068_v55  ;;  %v1189_v63 = vmul.f32 %v3070_v25, %v3070_v25  ;;  %v1000_v42 = vadd.f32 %v999_v8, %v998_v5  ;;  %v3113_v31 = vadd.f32 %v3916_v56, %v3906_v19 }
 0x22d   :  { %1011 = vadd.xlane.f32.xlu1 %v1010_v59  ;;  %v3917_v34 = vmov 5   ;;  %v3918_v26 = vmov 0   ;;  %v3919_v19 = vmov 6   ;;  %v3920_v45 = vmov 8  }
 0x22e   :  { %v1199_v14 = vsel %vm1007_vm10, %v1188_v11, 0.0  ;;  %v1200_v47 = vsel %vm1007_vm10, %v1189_v63, 0.0  ;;  %v1190_v50 = vsel %vm61_vm0, %v1188_v11, 0.0  ;;  %v1191_v29 = vsel %vm61_vm0, %v1189_v63, 0.0 }
 0x22f   :  { %v1201_v28 = vadd.f32 %v1200_v47, %v1199_v14  ;;  %v1192_v49 = vadd.f32 %v1191_v29, %v1190_v50 }
 0x231   :  { %1202 = vadd.xlane.f32.xlu0 %v1201_v28  ;;  %1193 = vadd.xlane.f32.xlu1 %v1192_v49 }
 0x235   :  { %1001 = vadd.xlane.f32.xlu0 %v1000_v42 }
 0x242   :  { %424 = vperm.xlu1 %2357, %v373_v35  }
 0x246   :  { %2358 = vset.pattern.permute.xlu1 %v3908_v1 }
 0x247   :  { %381 = vperm.xlu1 %2358, %v373_v35  }
 0x24b   :  { %2360 = vset.pattern.permute.xlu1 %v3909_v39  ;;  %1095 = vperm.xlu0 %2356, %v50_v61   ;;  %v3925_v39 = vld [vmem:[#allocation25_spill] sm:$0xff] }
 0x24c   :  { %570 = vperm.xlu1 %2360, %v373_v35  }
 0x24f   :  { %2359 = vset.pattern.permute.xlu0 %v3911_v36 }
 0x250   :  { %402 = vrot.lane.b32.xlu1 %v3092_v22, %s2462_s11  ;;  %497 = vperm.xlu0 %2359, %v373_v35  }
 0x251   :  { %2364 = vset.pattern.permute.xlu1 %v3912_v0 }
 0x254   :  { %554 = vrot.lane.b32.xlu1 %v3104_v10, %s2465_s13  ;;  %394 = vrot.lane.b32.xlu0 %v3100_v9, %s2462_s11 }
 0x255   :  { %2361 = vset.pattern.permute.xlu0 %v3915_v18 }
 0x258   :  { %615 = vrot.lane.b32.xlu1 %v3100_v9, %s2467_s15  ;;  %398 = vrot.lane.b32.xlu0 %v3113_v31, %s2462_s11 }
 0x25c   :  { %862 = vperm.xlu1 %2364, %v373_v35   ;;  %643 = vperm.xlu0 %2361, %v373_v35  }
 0x260   :  { %550 = vrot.lane.b32.xlu1 %v3092_v22, %s2465_s13  ;;  %406 = vrot.lane.b32.xlu0 %v3104_v10, %s2462_s11 }
 0x261   :  { %2362 = vset.pattern.permute.xlu0 %v3917_v34  ;;  %2366 = vset.pattern.permute.xlu1 %v3918_v26 }
 0x264   :  { %696 = vrot.lane.b32.xlu1 %v3092_v22, %s2468_s16  ;;  %469 = vrot.lane.b32.xlu0 %v3100_v9, %s2464_s12 }
 0x268   :  { %688 = vrot.lane.b32.xlu1 %v3100_v9, %s2468_s16  ;;  %473 = vrot.lane.b32.xlu0 %v3113_v31, %s2464_s12 }
 0x26c   :  { %623 = vrot.lane.b32.xlu1 %v3092_v22, %s2467_s15  ;;  %716 = vperm.xlu0 %2362, %v373_v35  }
 0x270   :  { %769 = vrot.lane.b32.xlu1 %v3092_v22, %s2469_s17  ;;  %481 = vrot.lane.b32.xlu0 %v3104_v10, %s2464_s12 }
 0x271   :  { %2363 = vset.pattern.permute.xlu0 %v3919_v19  ;;  %v3923_v19 = vld [vmem:[#allocation18_spill] sm:$0xff] }
 0x274   :  { %700 = vrot.lane.b32.xlu1 %v3104_v10, %s2468_s16  ;;  %542 = vrot.lane.b32.xlu0 %v3100_v9, %s2465_s13 }
 0x278   :  { %842 = vrot.lane.b32.xlu1 %v3092_v22, %s2463_s4  ;;  %546 = vrot.lane.b32.xlu0 %v3113_v31, %s2465_s13 }
 0x27c   :  { %773 = vrot.lane.b32.xlu1 %v3104_v10, %s2469_s17  ;;  %789 = vperm.xlu0 %2363, %v373_v35  }
 0x280   :  { %915 = vrot.lane.b32.xlu1 %v3092_v22, %s2466_s14  ;;  %477 = vrot.lane.b32.xlu0 %v3092_v22, %s2464_s12 }
 0x281   :  { %2365 = vset.pattern.permute.xlu0 %v3920_v45 }
 0x284   :  { %619 = vrot.lane.b32.xlu0 %v3113_v31, %s2467_s15 }
 0x288   :  { %627 = vrot.lane.b32.xlu0 %v3104_v10, %s2467_s15 }
 0x28c   :  { %692 = vrot.lane.b32.xlu0 %v3113_v31, %s2468_s16 }
 0x290   :  { %935 = vperm.xlu0 %2365, %v373_v35  }
 0x294   :  { %765 = vrot.lane.b32.xlu0 %v3113_v31, %s2469_s17 }
 0x295   :  { %2367 = vset.pattern.permute.xlu0 %v3918_v26 }
 0x298   :  { %761 = vrot.lane.b32.xlu0 %v3100_v9, %s2469_s17 }
 0x29c   :  { %838 = vrot.lane.b32.xlu0 %v3113_v31, %s2463_s4 }
 0x2a0   :  { %834 = vrot.lane.b32.xlu0 %v3100_v9, %s2463_s4 }
 0x2a4   :  { %911 = vrot.lane.b32.xlu0 %v3113_v31, %s2466_s14 }
 0x2a8   :  { %907 = vrot.lane.b32.xlu0 %v3100_v9, %s2466_s14 }
 0x2ac   :  { %919 = vrot.lane.b32.xlu0 %v3104_v10, %s2466_s14 }
 0x2ba   :  { %v1012_v54 = vpop.xlane.xlu1 %1011 }
 0x2bb   :  { %v1013_v59 = vmax.f32 %v1012_v54, 1e-24 }
 0x2bd   :  { %2388 = vrsqrt.f32 %v1013_v59 }
 0x2be   :  { %v1203_v11 = vpop.xlane.xlu0 %1202  ;;  %v1194_v63 = vpop.xlane.xlu1 %1193 }
 0x2bf   :  { %v1204_v14 = vmax.f32 %v1203_v11, 1e-24  ;;  %v1195_v47 = vmax.f32 %v1194_v63, 1e-24 }
 0x2c1   :  { %2390 = vrsqrt.f32 %v1204_v14 }
 0x2c2   :  { %v3176_v50 = vpop.permute.xlu1 %424  ;;  %v1002_v29 = vpop.xlane.xlu0 %1001  ;;  %2392 = vrsqrt.f32 %v1195_v47 }
 0x2c3   :  { %v1003_v28 = vmax.f32 %v1002_v29, 1e-24 }
 0x2c5   :  { %2394 = vrsqrt.f32 %v1003_v28 }
 0x2c6   :  { %v3178_v5 = vpop.permute.xlu1 %381 }
 0x2c7   :  { %v2389_v49 = vpop.eup %2388 }
 0x2c8   :  { %v1016_v8 = vmul.f32 %v2389_v49, %v3056_v38  ;;  %v1015_v42 = vmul.f32 %v2389_v49, %v3054_v60 }
 0x2ca   :  { %v1020_v35 = vrot.slane %v1016_v8, 4  ;;  %v1019_v61 = vrot.slane %v1015_v42, 4  ;;  %v3182_v2 = vpop.permute.xlu0 %1095 }
 0x2cb   :  { %v2391_v44 = vpop.eup %2390  ;;  %v3184_v20 = vpop.permute.xlu1 %570 }
 0x2cc   :  { %1023 = vmatprep.subr.mxu0 %v1020_v35  ;;  %v1207_v56 = vmul.f32 %v2391_v44, %v3070_v25  ;;  %v2393_v54 = vpop.eup %2392  ;;  %v1206_v11 = vmul.f32 %v2391_v44, %v3068_v55 }
 0x2cd   :  { %1024 = vmatpush1.xpose.msra.mxu0 %v1019_v61  ;;  %v1198_v8 = vmul.f32 %v2393_v54, %v3070_v25  ;;  %v1197_v61 = vmul.f32 %v2393_v54, %v3068_v55  ;;  %v390_v25 = vmul.f32 %v3178_v5, %v3092_v22 }
 0x2ce   :  { %v1211_v59 = vrot.slane %v1207_v56, 4  ;;  %v1210_v49 = vrot.slane %v1206_v11, 4  ;;  %v3922_v11 = vld [vmem:[#allocation20_spill] sm:$0xff] }
 0x2cf   :  { %v2395_v63 = vpop.eup %2394  ;;  %v403_v14 = vpop.permute.xlu1 %402 }
 0x2d0   :  { %v3188_v47 = vpop.permute.xlu0 %497  ;;  %1214 = vmatprep.subr.mxu0 %v1211_v59  ;;  %v1006_v29 = vmul.f32 %v2395_v63, %v3056_v38  ;;  %v1005_v28 = vmul.f32 %v2395_v63, %v3054_v60  ;;  %v3921_v60 = vmov 0.0  }
 0x2d2   :  { %1087 = vmatprep.mubr.f32.mxu0 %v1006_v29 }
 0x2d3   :  { %v3193_v42 = vpop.permute.xlu1 %554  ;;  %1088 = vmatmul.mubr.f32.vlgmr.msra.gmra.mrb[4].mxu0 %v1005_v28 }
 0x2d4   :  { %v395_v35 = vpop.permute.xlu0 %394  ;;  %1215 = vmatpush1.xpose.msra.mxu0 %v1210_v49  ;;  %1278 = vmatprep.mubr.f32.mxu0 %v1198_v8 }
 0x2d7   :  { %v3196_v44 = vpop.permute.xlu1 %615  ;;  %1279 = vmatmul.mubr.f32.vlgmr.msra.gmra.mrb[6].mxu0 %v1197_v61 }
 0x2d8   :  { %v399_v56 = vpop.permute.xlu0 %398  ;;  %1455 = vmatprep.mubr.f32.mxu0 %v3921_v60 }
 0x2d9   :  { %v414_v38 = vsel %vm410_vm2, %v399_v56, %v403_v14  ;;  %v416_v8 = vsel %vm410_vm2, %v395_v35, %v399_v56 }
 0x2da   :  { %v433_v59 = vmul.f32 %v3176_v50, %v414_v38 }
 0x2db   :  { %v3205_v29 = vpop.permute.xlu1 %862 }
 0x2dc   :  { %v457_v63 = vmul.f32 %v3922_v11, %v433_v59  ;;  %v3207_v28 = vpop.permute.xlu0 %643 }
 0x2de   :  { %v3209_v55 = vadd.f32 %v457_v63, %v390_v25  ;;  %v391_v25 = vmul.f32 %v3178_v5, %v3104_v10  ;;  %v432_v63 = vmul.f32 %v3176_v50, %v416_v8  ;;  %v389_v8 = vmul.f32 %v3178_v5, %v3113_v31 }
 0x2df   :  { %v551_v54 = vpop.permute.xlu1 %550  ;;  %v388_v31 = vmul.f32 %v3178_v5, %v3100_v9 }
 0x2e0   :  { %v407_v49 = vpop.permute.xlu0 %406  ;;  %v558_v61 = vsel %vm556_vm4, %v551_v54, %v3193_v42  ;;  %v456_v34 = vmul.f32 %v3923_v19, %v432_v63 }
 0x2e1   :  { %v412_v22 = vsel %vm410_vm2, %v403_v14, %v407_v49  ;;  %v580_v38 = vmul.f32 %v3184_v20, %v558_v61  ;;  %v418_v61 = vsel %vm410_vm2, %v407_v49, %v395_v35 }
 0x2e2   :  { %v434_v59 = vmul.f32 %v3176_v50, %v412_v22  ;;  %v431_v26 = vmul.f32 %v3176_v50, %v418_v61  ;;  %v3926_v61 = vld [vmem:[#allocation21_spill] sm:$0xff] }
 0x2e3   :  { %v3224_v45 = vpop.permute.xlu1 %696 }
 0x2e4   :  { %v458_v11 = vmul.f32 %v2825_v23, %v434_v59  ;;  %v470_v56 = vpop.permute.xlu0 %469  ;;  %v464_v23 = vadd.f32 %v456_v34, %v389_v8  ;;  %v455_v1 = vmul.f32 %v3925_v39, %v431_v26 }
 0x2e6   :  { %v466_v0 = vadd.f32 %v458_v11, %v391_v25  ;;  %v3924_v11 = vld [vmem:[#allocation27_spill] sm:$0xff]  ;;  %v463_v50 = vadd.f32 %v455_v1, %v388_v31 }
 0x2e7   :  { %v3227_v36 = vpop.permute.xlu1 %688 }
 0x2e8   :  { %v474_v14 = vpop.permute.xlu0 %473 }
 0x2e9   :  { %v489_v22 = vsel %vm483_vm3, %v470_v56, %v474_v14 }
 0x2ea   :  { %v505_v59 = vmul.f32 %v3188_v47, %v489_v22 }
 0x2eb   :  { %v624_v63 = vpop.permute.xlu1 %623 }
 0x2ec   :  { %v529_v25 = vmul.f32 %v3924_v11, %v505_v59  ;;  %v3238_v19 = vpop.permute.xlu0 %716 }
 0x2ee   :  { %v537_v18 = vadd.f32 %v529_v25, %v464_v23 }
 0x2ef   :  { %v3241_v35 = vpop.permute.xlu1 %769 }
 0x2f0   :  { %v482_v49 = vpop.permute.xlu0 %481 }
 0x2f1   :  { %v491_v60 = vsel %vm483_vm3, %v482_v49, %v470_v56 }
 0x2f2   :  { %v504_v34 = vmul.f32 %v3188_v47, %v491_v60 }
 0x2f3   :  { %v701_v8 = vpop.permute.xlu1 %700 }
 0x2f4   :  { %v528_v22 = vmul.f32 %v3926_v61, %v504_v34  ;;  %v543_v59 = vpop.permute.xlu0 %542  ;;  %v704_v23 = vsel %vm702_vm6, %v3224_v45, %v701_v8  ;;  %v710_v26 = vsel %vm702_vm6, %v701_v8, %v3227_v36 }
 0x2f5   :  { %v725_v56 = vmul.f32 %v3238_v19, %v704_v23  ;;  %v726_v9 = vmul.f32 %v3238_v19, %v710_v26 }
 0x2f6   :  { %v536_v25 = vadd.f32 %v528_v22, %v463_v50 }
 0x2f7   :  { %v3257_v5 = vpop.permute.xlu1 %842 }
 0x2f8   :  { %v547_v1 = vpop.permute.xlu0 %546 }
 0x2f9   :  { %v560_v60 = vsel %vm556_vm4, %v547_v1, %v551_v54  ;;  %v562_v34 = vsel %vm556_vm4, %v543_v59, %v547_v1  ;;  %v564_v54 = vsel %vm556_vm4, %v3193_v42, %v543_v59  ;;  %v604_v59 = vmul.f32 %v3899_v7, %v580_v38 }
 0x2fa   :  { %v579_v31 = vmul.f32 %v3184_v20, %v560_v60  ;;  %v578_v8 = vmul.f32 %v3184_v20, %v562_v34  ;;  %v577_v57 = vmul.f32 %v3184_v20, %v564_v54 }
 0x2fb   :  { %v774_v61 = vpop.permute.xlu1 %773 }
 0x2fc   :  { %v3264_v39 = vpop.permute.xlu0 %789  ;;  %v777_v50 = vsel %vm775_vm7, %v3241_v35, %v774_v61 }
 0x2fd   :  { %v798_v22 = vmul.f32 %v3264_v39, %v777_v50  ;;  %v602_v50 = vmul.f32 %v2800_v27, %v578_v8 }
 0x300   :  { %v478_v23 = vpop.permute.xlu0 %477 }
 0x301   :  { %v485_v26 = vsel %vm483_vm3, %v478_v23, %v482_v49  ;;  %v487_v1 = vsel %vm483_vm3, %v474_v14, %v478_v23  ;;  %v603_v49 = vmul.f32 %v2803_v33, %v579_v31 }
 0x302   :  { %v506_v60 = vmul.f32 %v3188_v47, %v487_v1  ;;  %v507_v11 = vmul.f32 %v3188_v47, %v485_v26  ;;  %v610_v26 = vadd.f32 %v602_v50, %v537_v18 }
 0x304   :  { %v530_v34 = vmul.f32 %v2835_v4, %v506_v60  ;;  %v531_v30 = vmul.f32 %v2797_v21, %v507_v11  ;;  %v620_v42 = vpop.permute.xlu0 %619  ;;  %v601_v11 = vmul.f32 %v2837_v37, %v577_v57  ;;  %v749_v21 = vmul.f32 %v2857_v46, %v725_v56 }
 0x305   :  { %v633_v14 = vsel %vm629_vm5, %v620_v42, %v624_v63  ;;  %v635_v47 = vsel %vm629_vm5, %v3196_v44, %v620_v42 }
 0x306   :  { %v538_v20 = vadd.f32 %v530_v34, %v3209_v55  ;;  %v539_v54 = vadd.f32 %v531_v30, %v466_v0  ;;  %v651_v8 = vmul.f32 %v3207_v28, %v635_v47  ;;  %v652_v23 = vmul.f32 %v3207_v28, %v633_v14 }
 0x307   :  { %v609_v50 = vadd.f32 %v601_v11, %v536_v25  ;;  %v822_v14 = vmul.f32 %v2870_v12, %v798_v22 }
 0x308   :  { %v611_v38 = vadd.f32 %v603_v49, %v538_v20  ;;  %v675_v31 = vmul.f32 %v2806_v24, %v651_v8  ;;  %v676_v1 = vmul.f32 %v2816_v58, %v652_v23  ;;  %v612_v60 = vadd.f32 %v604_v59, %v539_v54  ;;  %v628_v7 = vpop.permute.xlu0 %627 }
 0x309   :  { %v631_v55 = vsel %vm629_vm5, %v624_v63, %v628_v7  ;;  %v637_v30 = vsel %vm629_vm5, %v628_v7, %v3196_v44  ;;  %v750_v63 = vmul.f32 %v2862_v51, %v726_v9 }
 0x30a   :  { %v683_v0 = vadd.f32 %v675_v31, %v610_v26  ;;  %v684_v34 = vadd.f32 %v676_v1, %v611_v38  ;;  %v650_v57 = vmul.f32 %v3207_v28, %v637_v30  ;;  %v653_v18 = vmul.f32 %v3207_v28, %v631_v55 }
 0x30c   :  { %v757_v42 = vadd.f32 %v749_v21, %v684_v34  ;;  %v674_v59 = vmul.f32 %v2846_v48, %v650_v57  ;;  %v677_v49 = vmul.f32 %v2849_v41, %v653_v18  ;;  %v693_v56 = vpop.permute.xlu0 %692  ;;  %v916_v18 = vpop.permute.xlu1 %915 }
 0x30d   :  { %v706_v21 = vsel %vm702_vm6, %v693_v56, %v3224_v45  ;;  %v708_v38 = vsel %vm702_vm6, %v3227_v36, %v693_v56 }
 0x30e   :  { %v682_v47 = vadd.f32 %v674_v59, %v609_v50  ;;  %v685_v20 = vadd.f32 %v677_v49, %v612_v60  ;;  %v3309_v7 = vadd.f32 %v822_v14, %v757_v42  ;;  %v724_v23 = vmul.f32 %v3238_v19, %v706_v21 }
 0x30f   :  { %v723_v1 = vmul.f32 %v3238_v19, %v708_v38 }
 0x310   :  { %v3311_v44 = vpop.permute.xlu0 %935  ;;  %v758_v54 = vadd.f32 %v750_v63, %v685_v20  ;;  %v748_v60 = vmul.f32 %v2810_v52, %v724_v23  ;;  %v3927_v63 = vld [vmem:[#allocation23_spill] sm:$0xff] }
 0x311   :  { %v747_v50 = vmul.f32 %v2808_v6, %v723_v1  ;;  %v995_v1 = vld [vmem:[%s3795_s3] sm:$0xf] }
 0x312   :  { %v756_v42 = vadd.f32 %v748_v60, %v683_v0 }
 0x314   :  { %v766_v8 = vpop.permute.xlu0 %765 }
 0x315   :  { %v779_v9 = vsel %vm775_vm7, %v766_v8, %v3241_v35 }
 0x318   :  { %v762_v28 = vpop.permute.xlu0 %761 }
 0x319   :  { %v783_v25 = vsel %vm775_vm7, %v774_v61, %v762_v28  ;;  %v797_v61 = vmul.f32 %v3264_v39, %v779_v9  ;;  %v781_v35 = vsel %vm775_vm7, %v762_v28, %v766_v8  ;;  %v755_v8 = vadd.f32 %v747_v50, %v682_v47 }
 0x31a   :  { %v799_v22 = vmul.f32 %v3264_v39, %v783_v25  ;;  %v796_v57 = vmul.f32 %v3264_v39, %v781_v35 }
 0x31b   :  { %v821_v34 = vmul.f32 %v3897_v53, %v797_v61 }
 0x31c   :  { %v823_v11 = vmul.f32 %v3902_v40, %v799_v22  ;;  %v839_v26 = vpop.permute.xlu0 %838  ;;  %v820_v20 = vmul.f32 %v3927_v63, %v796_v57 }
 0x31d   :  { %v852_v45 = vsel %vm848_vm8, %v839_v26, %v3257_v5  ;;  %v829_v14 = vadd.f32 %v821_v34, %v756_v42 }
 0x31e   :  { %v3331_v31 = vadd.f32 %v823_v11, %v758_v54  ;;  %v870_v55 = vmul.f32 %v3205_v29, %v852_v45  ;;  %v828_v22 = vadd.f32 %v820_v20, %v755_v8 }
 0x320   :  { %v835_v30 = vpop.permute.xlu0 %834  ;;  %v894_v59 = vmul.f32 %v2867_v13, %v870_v55 }
 0x321   :  { %v854_v36 = vsel %vm848_vm8, %v835_v30, %v839_v26 }
 0x322   :  { %v869_v19 = vmul.f32 %v3205_v29, %v854_v36  ;;  %v902_v28 = vadd.f32 %v894_v59, %v829_v14 }
 0x324   :  { %v912_v49 = vpop.permute.xlu0 %911  ;;  %v893_v39 = vmul.f32 %v2864_v17, %v869_v19 }
 0x325   :  { %v925_v56 = vsel %vm921_vm9, %v912_v49, %v916_v18 }
 0x326   :  { %v943_v54 = vmul.f32 %v3311_v44, %v925_v56  ;;  %v901_v11 = vadd.f32 %v893_v39, %v828_v22 }
 0x328   :  { %v967_v21 = vmul.f32 %v3018_v32, %v943_v54  ;;  %v908_v0 = vpop.permute.xlu0 %907 }
 0x329   :  { %v927_v25 = vsel %vm921_vm9, %v908_v0, %v912_v49 }
 0x32a   :  { %v975_v9 = vadd.f32 %v967_v21, %v902_v28  ;;  %v942_v23 = vmul.f32 %v3311_v44, %v927_v25 }
 0x32c   :  { %v966_v26 = vmul.f32 %v3013_v3, %v942_v23  ;;  %v920_v38 = vpop.permute.xlu0 %919  ;;  %v992_v45 = vadd.f32 %v3905_v16, %v975_v9 }
 0x32d   :  { %v929_v47 = vsel %vm921_vm9, %v920_v38, %v908_v0  ;;  %v923_v28 = vsel %vm921_vm9, %v916_v18, %v920_v38 }
 0x32e   :  { %v974_v61 = vadd.f32 %v966_v26, %v901_v11  ;;  %v945_v32 = vmul.f32 %v3311_v44, %v929_v47  ;;  %2305 = vmatprep.subr.msk.mxu1 %vm61_vm0, %v992_v45  ;;  %v944_v25 = vmul.f32 %v3311_v44, %v923_v28  ;;  %v3928_v26 = vld [vmem:[#allocation19_spill] sm:$0xff]  ;;  %v3930_v44 = vmov 0.0  }
 0x32f   :  { %v3929_v45 = vld [vmem:[#allocation15_spill] sm:$0xff] }
 0x330   :  { %v991_v35 = vadd.f32 %v3905_v16, %v974_v61  ;;  %v968_v38 = vmul.f32 %v3928_v26, %v944_v25  ;;  %v969_v47 = vmul.f32 %v3929_v45, %v945_v32  ;;  %v3932_v32 = vmov 2  }
 0x332   :  { %2306 = vmatpush1.msk.msra.mxu1 %vm61_vm0, %v991_v35 }
 0x3a6   :  { %v1089_v3 = vpop.f32.mrb[4].mxu0 }
 0x3a7   :  { %v1098_v60 = vmul.f32 %v3182_v2, %v1089_v3  ;;  %v1091_v55 = vpop.f32.mrb[5].mxu0 }
 0x3a8   :  { %v3933_v55 = vmov 3  }
 0x3a9   :  { %v1099_v36 = vadd.f32 %v1098_v60, %v995_v1 }
 0x3aa   :  { %v1280_v34 = vpop.f32.mrb[6].mxu0 }
 0x3ab   :  { %v1100_v57 = vmul.f32 1.442695, %v1099_v36  ;;  %v1284_v50 = vmul.f32 %v1280_v34, %v3182_v2  ;;  %v1282_v42 = vpop.f32.mrb[7].mxu0  ;;  %v3934_v36 = vmov 0  }
 0x3ad   :  { %2396 = vpow2.f32 %v1100_v57  ;;  %v1285_v59 = vadd.f32 %v1284_v50, %v995_v1  ;;  %v1373_v50 = vld [vmem:[%s3798_s6] sm:$0xf] }
 0x3af   :  { %v1286_v19 = vmul.f32 1.442695, %v1285_v59 }
 0x3b1   :  { %2398 = vpow2.f32 %v1286_v19  ;;  %v52_v19 = vld [vmem:[%s3794_s2 + $0x30] sm:$0xff] }
 0x3b2   :  { %1676 = vperm.xlu0 %2367, %v52_v19  }
 0x3b7   :  { %v2397_v49 = vpop.eup %2396 }
 0x3b8   :  { %v1103_v56 = vsel %vm1102_vm11, %v2397_v49, 0.0 }
 0x3b9   :  { %1104 = vadd.xlane.f32.xlu1 %v1103_v56  ;;  %v3936_v56 = vmov 5  }
 0x3bb   :  { %v2399_v14 = vpop.eup %2398 }
 0x3bc   :  { %v1288_v20 = vsel %vm1102_vm11, %v2399_v14, 0.0 }
 0x3bd   :  { %1289 = vadd.xlane.f32.xlu1 %v1288_v20  ;;  %v3938_v20 = vmov 7  }
 0x3ce   :  { %846 = vrot.lane.b32.xlu1 %v3104_v10, %s2463_s4 }
 0x446   :  { %v1105_v54 = vpop.xlane.xlu1 %1104 }
 0x447   :  { %2400 = vrcp.f32 %v1105_v54  ;;  %v3939_v54 = vmov 8  }
 0x44a   :  { %v1290_v8 = vpop.xlane.xlu1 %1289 }
 0x44b   :  { %2402 = vrcp.f32 %v1290_v8  ;;  %v1374_v8 = vrot.slane %v3182_v2, 4 }
 0x44e   :  { %v847_v39 = vpop.permute.xlu1 %846 }
 0x44f   :  { %v850_v21 = vsel %vm848_vm8, %v3257_v5, %v847_v39  ;;  %v856_v0 = vsel %vm848_vm8, %v847_v39, %v835_v30 }
 0x450   :  { %v871_v22 = vmul.f32 %v3205_v29, %v850_v21  ;;  %v872_v10 = vmul.f32 %v3205_v29, %v856_v0 }
 0x451   :  { %v2401_v9 = vpop.eup %2400 }
 0x452   :  { %v1107_v23 = vmul.f32 %v2401_v9, %v2397_v49  ;;  %v895_v11 = vmul.f32 %v2888_v15, %v871_v22  ;;  %v896_v18 = vmul.f32 %v2897_v43, %v872_v10  ;;  %v3935_v49 = vmov 1   ;;  %v2420_v22 = vld [vmem:[%s3792_s0] sm:$0xff] }
 0x453   :  { %2369 = vset.pattern.permute.xlu0 %v3935_v49 }
 0x454   :  { %v903_v5 = vadd.f32 %v895_v11, %v3309_v7  ;;  %v904_v30 = vadd.f32 %v896_v18, %v3331_v31  ;;  %2307 = vmatmul.mubr.msk.f32.vlgmr.msra.gmra.mrb[4].mxu1 %vm203_vm1, %v1107_v23  ;;  %v51_v7 = vld [vmem:[%s3794_s2 + $0x28] sm:$0xff]  ;;  %v1836_v31 = vld [vmem:[%s3800_s8] sm:$0xff] }
 0x455   :  { %1366 = vmatprep.mubr.f32.mxu1 %v3930_v44  ;;  %v2403_v35 = vpop.eup %2402  ;;  %1651 = vperm.xlu1 %2366, %v51_v7  }
 0x456   :  { %v976_v61 = vadd.f32 %v968_v38, %v903_v5  ;;  %v977_v29 = vadd.f32 %v969_v47, %v904_v30  ;;  %v1292_v60 = vmul.f32 %v2403_v35, %v2399_v14  ;;  %1887 = vperm.xlu0 %2369, %v1836_v31   ;;  %v3937_v14 = vmov 6   ;;  %v2421_v35 = vld [vmem:[%s3792_s0 + $0x8] sm:$0xff] }
 0x458   :  { %v993_v1 = vadd.f32 %v3905_v16, %v976_v61  ;;  %v994_v3 = vadd.f32 %v3905_v16, %v977_v29  ;;  %v3931_v16 = vmov 4  }
 0x459   :  { %1859 = vperm.xlu1 %2366, %v1836_v31  }
 0x45a   :  { %2308 = vmatprep.subr.msk.mxu1 %vm61_vm0, %v994_v3  ;;  %2372 = vset.pattern.permute.xlu0 %v3936_v56 }
 0x45b   :  { %2309 = vmatpush1.msk.msra.mxu1 %vm61_vm0, %v993_v1  ;;  %1971 = vperm.xlu0 %2372, %v1836_v31  }
 0x45c   :  { %2310 = vmatmul.mubr.msk.f32.vlgmr.msra.gmra.mrb[6].mxu1 %vm203_vm1, %v1292_v60 }
 0x45d   :  { %1526 = vmatprep.mubr.f32.mxu1 %v3930_v44  ;;  %2368 = vset.pattern.permute.xlu1 %v3931_v16 }
 0x45e   :  { %1839 = vperm.xlu1 %2368, %v1836_v31  }
 0x45f   :  { %2373 = vset.pattern.permute.xlu0 %v3937_v14 }
 0x460   :  { %1999 = vperm.xlu0 %2373, %v1836_v31  }
 0x462   :  { %2370 = vset.pattern.permute.xlu1 %v3932_v32 }
 0x463   :  { %1915 = vperm.xlu1 %2370, %v1836_v31  }
 0x464   :  { %2374 = vset.pattern.permute.xlu0 %v3938_v20 }
 0x465   :  { %2027 = vperm.xlu0 %2374, %v1836_v31  }
 0x467   :  { %2371 = vset.pattern.permute.xlu1 %v3933_v55 }
 0x468   :  { %1943 = vperm.xlu1 %2371, %v1836_v31  }
 0x469   :  { %2375 = vset.pattern.permute.xlu0 %v3939_v54 }
 0x46a   :  { %2055 = vperm.xlu0 %2375, %v1836_v31  }
 0x46c   :  { %2377 = vset.pattern.permute.xlu1 %v3934_v36 }
 0x46e   :  { %2376 = vset.pattern.permute.xlu0 %v3934_v36 }
 0x527   :  { %v1183_v34 = vpop.f32.mrb[4].mxu1 }
 0x528   :  { %v1185_v57 = vpop.f32.mrb[5].mxu1 }
 0x529   :  { %2311 = vmatprep.subr.msk.mxu0 %vm61_vm0, %v1185_v57 }
 0x52a   :  { %2312 = vmatpush1.msk.msra.mxu0 %vm61_vm0, %v1183_v34 }
 0x52b   :  { %2313 = vmatmul.mubr.msk.f32.vlgmr.msra.gmra.mrb[8].mxu0 %vm203_vm1, %v1373_v50 }
 0x52c   :  { %1758 = vmatprep.mubr.f32.mxu0 %v3930_v44 }
 0x52f   :  { %v1368_v42 = vpop.f32.mrb[6].mxu1 }
 0x530   :  { %v1370_v59 = vpop.f32.mrb[7].mxu1 }
 0x531   :  { %2314 = vmatprep.subr.msk.mxu1 %vm61_vm0, %v1370_v59 }
 0x532   :  { %2315 = vmatpush1.msk.msra.mxu1 %vm61_vm0, %v1368_v42 }
 0x533   :  { %2316 = vmatmul.mubr.msk.f32.vlgmr.msra.gmra.mrb[8].mxu1 %vm203_vm1, %v1373_v50 }
 0x534   :  { %1829 = vmatprep.mubr.f32.mxu1 %v3930_v44 }
 0x5fe   :  { %v1457_v28 = vpop.f32.mrb[8].mxu0 }
 0x5ff   :  { %v1458_v39 = vadd.f32 %v1457_v28, %v1374_v8  ;;  %v1459_v21 = vpop.f32.mrb[9].mxu0 }
 0x600   :  { %v1460_v0 = vadd.f32 %v1459_v21, %v1374_v8 }
 0x602   :  { %v1537_v25 = vcombine.low %v1458_v39, %v1460_v0 }
 0x604   :  { %v3427_v10 = vadd.f32 %v2420_v22, %v1537_v25 }
 0x606   :  { %3940 = vst [vmem:[#allocation14_spill] sm:$0xff] %v3427_v10  ;;  %v1545_v9 = vcombine.high %v3427_v10, %v3427_v10  ;;  %v1549_v23 = vsel %vm61_vm0, %v3427_v10, 0.0  ;;  %v1528_v11 = vpop.f32.mrb[8].mxu1 }
 0x607   :  { %v1550_v18 = vrot.slane %v1549_v23, 4  ;;  %v1529_v2 = vadd.f32 %v1528_v11, %v1374_v8  ;;  %v1530_v26 = vpop.f32.mrb[9].mxu1 }
 0x608   :  { %v1556_v38 = vsel %vm61_vm0, %v1545_v9, 0.0  ;;  %v1531_v45 = vadd.f32 %v1530_v26, %v1374_v8 }
 0x609   :  { %v1551_v47 = vadd.f32 %v1550_v18, %v1549_v23  ;;  %v1557_v5 = vrot.slane %v1556_v38, 4 }
 0x60a   :  { %v1538_v30 = vcombine.low %v1529_v2, %v1531_v45 }
 0x60b   :  { %v1552_v61 = vrot.slane %v1551_v47, 2  ;;  %v1558_v29 = vadd.f32 %v1557_v5, %v1556_v38 }
 0x60c   :  { %v3437_v1 = vadd.f32 %v2421_v35, %v1538_v30 }
 0x60d   :  { %v1553_v3 = vadd.f32 %v1552_v61, %v1551_v47  ;;  %v1559_v60 = vrot.slane %v1558_v29, 2 }
 0x60e   :  { %3941 = vst [vmem:[#allocation24_spill] sm:$0xff] %v3437_v1  ;;  %v1546_v7 = vcombine.high %v3437_v1, %v3437_v1  ;;  %v1563_v31 = vsel %vm61_vm0, %v3437_v1, 0.0 }
 0x60f   :  { %v1564_v16 = vrot.slane %v1563_v31, 4  ;;  %v1554_v32 = vrot.slane %v1553_v3, 1  ;;  %v1560_v55 = vadd.f32 %v1559_v60, %v1558_v29 }
 0x610   :  { %v1570_v36 = vsel %vm61_vm0, %v1546_v7, 0.0 }
 0x611   :  { %v1565_v34 = vadd.f32 %v1564_v16, %v1563_v31  ;;  %v1571_v57 = vrot.slane %v1570_v36, 4  ;;  %v1555_v50 = vadd.f32 %v1554_v32, %v1553_v3  ;;  %v1561_v42 = vrot.slane %v1560_v55, 1 }
 0x613   :  { %v1566_v59 = vrot.slane %v1565_v34, 2  ;;  %v1572_v19 = vadd.f32 %v1571_v57, %v1570_v36  ;;  %v1562_v49 = vadd.f32 %v1561_v42, %v1560_v55  ;;  %v1577_v20 = vmul.f32 0.25, %v1555_v50 }
 0x615   :  { %v1567_v56 = vadd.f32 %v1566_v59, %v1565_v34  ;;  %v1573_v14 = vrot.slane %v1572_v19, 2  ;;  %v1578_v54 = vmul.f32 0.25, %v1562_v49 }
 0x617   :  { %v1568_v8 = vrot.slane %v1567_v56, 1  ;;  %v1574_v28 = vadd.f32 %v1573_v14, %v1572_v19  ;;  %v1585_v39 = vcombine.low %v1577_v20, %v1578_v54 }
 0x619   :  { %v1569_v21 = vadd.f32 %v1568_v8, %v1567_v56  ;;  %v1575_v0 = vrot.slane %v1574_v28, 1  ;;  %v1589_v25 = vsub.f32 %v3427_v10, %v1585_v39 }
 0x61b   :  { %v1576_v22 = vadd.f32 %v1575_v0, %v1574_v28  ;;  %v1591_v9 = vmul.f32 %v1589_v25, %v1589_v25  ;;  %v1579_v23 = vmul.f32 0.25, %v1569_v21 }
 0x61d   :  { %v1580_v11 = vmul.f32 0.25, %v1576_v22  ;;  %v1595_v18 = vcombine.high %v1591_v9, %v1591_v9  ;;  %v1599_v2 = vsel %vm61_vm0, %v1591_v9, 0.0 }
 0x61e   :  { %v1600_v26 = vrot.slane %v1599_v2, 4 }
 0x61f   :  { %v1586_v38 = vcombine.low %v1579_v23, %v1580_v11  ;;  %v1606_v45 = vsel %vm61_vm0, %v1595_v18, 0.0 }
 0x620   :  { %v1601_v47 = vadd.f32 %v1600_v26, %v1599_v2  ;;  %v1607_v5 = vrot.slane %v1606_v45, 4 }
 0x621   :  { %v1590_v30 = vsub.f32 %v3437_v1, %v1586_v38 }
 0x622   :  { %v1602_v61 = vrot.slane %v1601_v47, 2  ;;  %v1608_v29 = vadd.f32 %v1607_v5, %v1606_v45  ;;  %v1652_v45 = vpop.permute.xlu1 %1651  ;;  %v3942_v5 = vld [vmem:[#allocation5_spill] sm:$0xff] }
 0x623   :  { %v1592_v35 = vmul.f32 %v1590_v30, %v1590_v30 }
 0x624   :  { %v1603_v3 = vadd.f32 %v1602_v61, %v1601_v47  ;;  %v1609_v60 = vrot.slane %v1608_v29, 2  ;;  %v1659_v61 = vrot.slane %v1652_v45, %v3942_v5 }
 0x625   :  { %v1596_v7 = vcombine.high %v1592_v35, %v1592_v35  ;;  %v1613_v31 = vsel %vm61_vm0, %v1592_v35, 0.0 }
 0x626   :  { %v1604_v16 = vrot.slane %v1603_v3, 1  ;;  %v1610_v32 = vadd.f32 %v1609_v60, %v1608_v29  ;;  %v1614_v55 = vrot.slane %v1613_v31, 4 }
 0x627   :  { %v1620_v36 = vsel %vm61_vm0, %v1596_v7, 0.0 }
 0x628   :  { %v1605_v34 = vadd.f32 %v1604_v16, %v1603_v3  ;;  %v1611_v57 = vrot.slane %v1610_v32, 1  ;;  %v1615_v50 = vadd.f32 %v1614_v55, %v1613_v31  ;;  %v1621_v42 = vrot.slane %v1620_v36, 4  ;;  %v3943_v3 = vld [vmem:[#allocation6_spill] sm:$0xff] }
 0x629   :  { %v1669_v60 = vrot.slane %v1652_v45, %v3943_v3 }
 0x62a   :  { %v1612_v59 = vadd.f32 %v1611_v57, %v1610_v32  ;;  %v1616_v19 = vrot.slane %v1615_v50, 2  ;;  %v1622_v49 = vadd.f32 %v1621_v42, %v1620_v36  ;;  %v1627_v56 = vmul.f32 0.25, %v1605_v34  ;;  %v1673_v36 = vld [vmem:[%s3799_s7] sm:$0xff]  ;;  %v1677_v42 = vpop.permute.xlu0 %1676 }
 0x62c   :  { %v1617_v14 = vadd.f32 %v1616_v19, %v1615_v50  ;;  %v1623_v20 = vrot.slane %v1622_v49, 2  ;;  %v1628_v54 = vmul.f32 0.25, %v1612_v59  ;;  %v1631_v8 = vadd.f32 1e-05, %v1627_v56 }
 0x62e   :  { %v1618_v28 = vrot.slane %v1617_v14, 1  ;;  %v1624_v39 = vadd.f32 %v1623_v20, %v1622_v49  ;;  %v1632_v21 = vadd.f32 1e-05, %v1628_v54  ;;  %2404 = vrsqrt.f32 %v1631_v8 }
 0x630   :  { %v1619_v0 = vadd.f32 %v1618_v28, %v1617_v14  ;;  %v1625_v22 = vrot.slane %v1624_v39, 1  ;;  %2406 = vrsqrt.f32 %v1632_v21  ;;  %v53_v21 = vld [vmem:[%s3794_s2 + $0x38] sm:$0xff] }
 0x632   :  { %v1626_v9 = vadd.f32 %v1625_v22, %v1624_v39  ;;  %v1629_v23 = vmul.f32 0.25, %v1619_v0  ;;  %v3528_v0 = vpop.permute.xlu0 %1887 }
 0x634   :  { %v1630_v11 = vmul.f32 0.25, %v1626_v9  ;;  %v1633_v18 = vadd.f32 1e-05, %v1629_v23  ;;  %v54_v23 = vld [vmem:[%s3794_s2 + $0x40] sm:$0xf] }
 0x636   :  { %v1634_v2 = vadd.f32 1e-05, %v1630_v11  ;;  %2408 = vrsqrt.f32 %v1633_v18  ;;  %v3530_v22 = vpop.permute.xlu0 %1971 }
 0x638   :  { %2410 = vrsqrt.f32 %v1634_v2  ;;  %v2405_v26 = vpop.eup %2404 }
 0x63a   :  { %v2407_v38 = vpop.eup %2406  ;;  %v3532_v9 = vpop.permute.xlu0 %1999 }
 0x63b   :  { %v1643_v47 = vcombine.low %v2405_v26, %v2407_v38 }
 0x63d   :  { %v1647_v29 = vmul.f32 %v1643_v47, %v1589_v25 }
 0x63e   :  { %v3539_v18 = vpop.permute.xlu0 %2027 }
 0x63f   :  { %v1661_v35 = vmul.f32 %v1659_v61, %v1647_v29 }
 0x640   :  { %v2409_v7 = vpop.eup %2408 }
 0x641   :  { %v1671_v31 = vadd.f32 %v1669_v60, %v1661_v35 }
 0x642   :  { %v2411_v16 = vpop.eup %2410  ;;  %v3543_v26 = vpop.permute.xlu0 %2055 }
 0x643   :  { %v1644_v32 = vcombine.low %v2409_v7, %v2411_v16  ;;  %v1681_v55 = vcombine.high %v1671_v31, %v1671_v31 }
 0x645   :  { %v1648_v34 = vmul.f32 %v1644_v32, %v1590_v30  ;;  %2317 = vmatprep.subr.msk.mxu0 %vm61_vm0, %v1681_v55  ;;  %v3463_v30 = vpop.permute.xlu1 %1859 }
 0x646   :  { %2318 = vmatpush1.msk.msra.mxu0 %vm61_vm0, %v1671_v31 }
 0x647   :  { %v1662_v57 = vmul.f32 %v1659_v61, %v1648_v34  ;;  %2319 = vmatmul.mubr.msk.f32.vlgmr.msra.gmra.mrb[10].mxu0 %vm203_vm1, %v1673_v36 }
 0x648   :  { %2189 = vmatprep.mubr.f32.mxu0 %v3930_v44 }
 0x649   :  { %v1672_v25 = vadd.f32 %v1669_v60, %v1662_v57  ;;  %v3465_v19 = vpop.permute.xlu1 %1839 }
 0x64b   :  { %v1682_v50 = vcombine.high %v1672_v25, %v1672_v25 }
 0x64d   :  { %2320 = vmatprep.subr.msk.mxu1 %vm61_vm0, %v1682_v50  ;;  %v3537_v11 = vpop.permute.xlu1 %1915 }
 0x64e   :  { %2321 = vmatpush1.msk.msra.mxu1 %vm61_vm0, %v1672_v25 }
 0x64f   :  { %2322 = vmatmul.mubr.msk.f32.vlgmr.msra.gmra.mrb[10].mxu1 %vm203_vm1, %v1673_v36 }
 0x650   :  { %2260 = vmatprep.mubr.f32.mxu1 %v3930_v44 }
 0x651   :  { %v3541_v2 = vpop.permute.xlu1 %1943 }
 0x71a   :  { %v1760_v59 = vpop.f32.mrb[10].mxu0 }
 0x71b   :  { %v1761_v49 = vadd.f32 %v1760_v59, %v1677_v42  ;;  %v1762_v56 = vpop.f32.mrb[11].mxu0 }
 0x71c   :  { %v3474_v20 = vadd.f32 %v1762_v56, %v1677_v42 }
 0x71d   :  { %v3468_v14 = vmul.f32 %v3465_v19, %v1761_v49  ;;  %1874 = vrot.lane.b32.xlu0 %v1761_v49, %s2464_s12  ;;  %1846 = vrot.lane.b32.xlu1 %v1761_v49, %s2462_s11 }
 0x71e   :  { %v1843_v43 = vmul.f32 %v3465_v19, %v3474_v20 }
 0x721   :  { %2014 = vrot.lane.b32.xlu0 %v1761_v49, %s2463_s4  ;;  %1902 = vrot.lane.b32.xlu1 %v1761_v49, %s2465_s13 }
 0x722   :  { %v1831_v44 = vpop.f32.mrb[10].mxu1 }
 0x723   :  { %v1832_v54 = vadd.f32 %v1831_v44, %v1677_v42  ;;  %v1833_v8 = vpop.f32.mrb[11].mxu1 }
 0x724   :  { %v3495_v39 = vadd.f32 %v1833_v8, %v1677_v42 }
 0x725   :  { %1848 = vrot.lane.b32.xlu0 %v3474_v20, %s2462_s11  ;;  %1930 = vrot.lane.b32.xlu1 %v1761_v49, %s2467_s15  ;;  %v3480_v28 = vmul.f32 %v3465_v19, %v1832_v54 }
 0x729   :  { %1878 = vrot.lane.b32.xlu0 %v1832_v54, %s2464_s12  ;;  %1958 = vrot.lane.b32.xlu1 %v1761_v49, %s2468_s16 }
 0x72d   :  { %1906 = vrot.lane.b32.xlu0 %v1832_v54, %s2465_s13  ;;  %1986 = vrot.lane.b32.xlu1 %v1761_v49, %s2469_s17 }
 0x731   :  { %1934 = vrot.lane.b32.xlu0 %v1832_v54, %s2467_s15  ;;  %1876 = vrot.lane.b32.xlu1 %v3474_v20, %s2464_s12 }
 0x735   :  { %1962 = vrot.lane.b32.xlu0 %v1832_v54, %s2468_s16  ;;  %1904 = vrot.lane.b32.xlu1 %v3474_v20, %s2465_s13 }
 0x739   :  { %1990 = vrot.lane.b32.xlu0 %v1832_v54, %s2469_s17  ;;  %1932 = vrot.lane.b32.xlu1 %v3474_v20, %s2467_s15 }
 0x73d   :  { %1852 = vrot.lane.b32.xlu0 %v3495_v39, %s2462_s11  ;;  %1960 = vrot.lane.b32.xlu1 %v3474_v20, %s2468_s16 }
 0x741   :  { %2018 = vrot.lane.b32.xlu0 %v1832_v54, %s2463_s4  ;;  %1988 = vrot.lane.b32.xlu1 %v3474_v20, %s2469_s17 }
 0x745   :  { %2042 = vrot.lane.b32.xlu0 %v1761_v49, %s2466_s14  ;;  %2016 = vrot.lane.b32.xlu1 %v3474_v20, %s2463_s4 }
 0x749   :  { %2046 = vrot.lane.b32.xlu0 %v1832_v54, %s2466_s14  ;;  %1850 = vrot.lane.b32.xlu1 %v1832_v54, %s2462_s11 }
 0x74d   :  { %2072 = vperm.xlu0 %2376, %v53_v21   ;;  %2044 = vrot.lane.b32.xlu1 %v3474_v20, %s2466_s14 }
 0x751   :  { %1880 = vrot.lane.b32.xlu1 %v3495_v39, %s2464_s12 }
 0x755   :  { %1908 = vrot.lane.b32.xlu1 %v3495_v39, %s2465_s13 }
 0x759   :  { %1936 = vrot.lane.b32.xlu1 %v3495_v39, %s2467_s15 }
 0x75d   :  { %1964 = vrot.lane.b32.xlu1 %v3495_v39, %s2468_s16 }
 0x761   :  { %1992 = vrot.lane.b32.xlu1 %v3495_v39, %s2469_s17 }
 0x765   :  { %2020 = vrot.lane.b32.xlu1 %v3495_v39, %s2463_s4 }
 0x769   :  { %2048 = vrot.lane.b32.xlu1 %v3495_v39, %s2466_s14 }
 0x76d   :  { %2118 = vperm.xlu1 %2377, %v54_v23   ;;  %v3944_v23 = vld [vmem:[#allocation18_spill] sm:$0xff] }
 0x78f   :  { %v1847_v38 = vpop.permute.xlu1 %1846  ;;  %v3545_v45 = vpop.permute.xlu0 %1874 }
 0x793   :  { %v3547_v47 = vpop.permute.xlu1 %1902  ;;  %v3549_v5 = vpop.permute.xlu0 %2014 }
 0x797   :  { %v3551_v61 = vpop.permute.xlu1 %1930  ;;  %v1849_v29 = vpop.permute.xlu0 %1848 }
 0x798   :  { %v1856_v50 = vsel %vm410_vm2, %v1847_v38, %v1849_v29 }
 0x799   :  { %v1863_v56 = vmul.f32 %v3463_v30, %v1856_v50 }
 0x79b   :  { %v3553_v35 = vpop.permute.xlu1 %1958  ;;  %v3555_v3 = vpop.permute.xlu0 %1878  ;;  %v1867_v1 = vmul.f32 %v1863_v56, %v3944_v23 }
 0x79d   :  { %v1871_v23 = vadd.f32 %v1867_v1, %v1843_v43  ;;  %v3946_v1 = vld [vmem:[#allocation20_spill] sm:$0xff] }
 0x79f   :  { %v3557_v60 = vpop.permute.xlu1 %1986  ;;  %v3559_v7 = vpop.permute.xlu0 %1906 }
 0x7a3   :  { %v1877_v31 = vpop.permute.xlu1 %1876  ;;  %v3561_v16 = vpop.permute.xlu0 %1934 }
 0x7a4   :  { %v1884_v59 = vsel %vm483_vm3, %v3545_v45, %v1877_v31  ;;  %v1883_v10 = vsel %vm483_vm3, %v1877_v31, %v3555_v3 }
 0x7a5   :  { %v1891_v54 = vmul.f32 %v3528_v0, %v1884_v59  ;;  %v3945_v59 = vld [vmem:[#allocation27_spill] sm:$0xff] }
 0x7a7   :  { %v1905_v32 = vpop.permute.xlu1 %1904  ;;  %v3563_v55 = vpop.permute.xlu0 %1962  ;;  %v1895_v40 = vmul.f32 %v1891_v54, %v3945_v59 }
 0x7a8   :  { %v1912_v44 = vsel %vm556_vm4, %v3547_v47, %v1905_v32  ;;  %v1911_v12 = vsel %vm556_vm4, %v1905_v32, %v3559_v7 }
 0x7a9   :  { %v1919_v50 = vmul.f32 %v3537_v11, %v1912_v44  ;;  %v1892_v44 = vmul.f32 %v3528_v0, %v1883_v10  ;;  %v1920_v59 = vmul.f32 %v3537_v11, %v1911_v12  ;;  %v1899_v17 = vadd.f32 %v1895_v40, %v1871_v23 }
 0x7ab   :  { %v1933_v36 = vpop.permute.xlu1 %1932  ;;  %v3565_v34 = vpop.permute.xlu0 %1990  ;;  %v1923_v54 = vmul.f32 %v1919_v50, %v2800_v27  ;;  %v1896_v12 = vmul.f32 %v1892_v44, %v2835_v4  ;;  %v1924_v44 = vmul.f32 %v1920_v59, %v2803_v33 }
 0x7ac   :  { %v1940_v21 = vsel %vm629_vm5, %v3551_v61, %v1933_v36  ;;  %v1939_v46 = vsel %vm629_vm5, %v1933_v36, %v3561_v16 }
 0x7ad   :  { %v1947_v51 = vmul.f32 %v3541_v2, %v1940_v21 }
 0x7af   :  { %v3567_v57 = vpop.permute.xlu1 %1960  ;;  %v1853_v25 = vpop.permute.xlu0 %1852  ;;  %v1951_v43 = vmul.f32 %v1947_v51, %v2806_v24  ;;  %v1927_v51 = vadd.f32 %v1923_v54, %v1899_v17 }
 0x7b0   :  { %v1967_v31 = vsel %vm702_vm6, %v3567_v57, %v3563_v55 }
 0x7b1   :  { %v1975_v10 = vmul.f32 %v3530_v22, %v1967_v31  ;;  %v1948_v31 = vmul.f32 %v3541_v2, %v1939_v46 }
 0x7b3   :  { %v3571_v42 = vpop.permute.xlu1 %1988  ;;  %v3576_v49 = vpop.permute.xlu0 %2018 }
 0x7b4   :  { %v1995_v32 = vsel %vm775_vm7, %v3571_v42, %v3565_v34 }
 0x7b5   :  { %v2003_v36 = vmul.f32 %v3532_v9, %v1995_v32 }
 0x7b7   :  { %v3583_v8 = vpop.permute.xlu1 %2016  ;;  %v3595_v15 = vpop.permute.xlu0 %2042 }
 0x7b8   :  { %v2023_v27 = vsel %vm848_vm8, %v3583_v8, %v3576_v49 }
 0x7b9   :  { %v2031_v32 = vmul.f32 %v3539_v18, %v2023_v27  ;;  %v1845_v27 = vmul.f32 %v3465_v19, %v3495_v39 }
 0x7bb   :  { %v1851_v56 = vpop.permute.xlu1 %1850  ;;  %v3634_v24 = vpop.permute.xlu0 %2046 }
 0x7bc   :  { %v1855_v20 = vsel %vm410_vm2, %v1849_v29, %v1851_v56  ;;  %v1854_v40 = vsel %vm410_vm2, %v1851_v56, %v1853_v25 }
 0x7bd   :  { %v1864_v21 = vmul.f32 %v3463_v30, %v1855_v20  ;;  %v1857_v20 = vsel %vm410_vm2, %v1853_v25, %v1847_v38  ;;  %v1979_v38 = vmul.f32 %v1975_v10, %v2810_v52  ;;  %v1865_v17 = vmul.f32 %v3463_v30, %v1854_v40 }
 0x7be   :  { %v1862_v25 = vmul.f32 %v3463_v30, %v1857_v20  ;;  %v1952_v52 = vmul.f32 %v1948_v31, %v2816_v58  ;;  %v3950_v31 = vld [vmem:[#allocation22_spill] sm:$0xff] }
 0x7bf   :  { %v1868_v29 = vmul.f32 %v1864_v21, %v3946_v1  ;;  %v3626_v50 = vpop.permute.xlu1 %2044  ;;  %v1955_v21 = vadd.f32 %v1951_v43, %v1927_v51 }
 0x7c0   :  { %v2051_v4 = vsel %vm921_vm9, %v3626_v50, %v3634_v24 }
 0x7c1   :  { %v1872_v23 = vadd.f32 %v1868_v29, %v3480_v28  ;;  %v2007_v28 = vmul.f32 %v2003_v36, %v3897_v53  ;;  %v2059_v54 = vmul.f32 %v3543_v26, %v2051_v4  ;;  %v1983_v43 = vadd.f32 %v1979_v38, %v1955_v21  ;;  %v3947_v29 = vld [vmem:[#allocation25_spill] sm:$0xff] }
 0x7c2   :  { %v2035_v53 = vmul.f32 %v2031_v32, %v2867_v13  ;;  %v2422_v13 = vld [vmem:[%s3793_s1 + $0x28] ss:$0 sm:$0xff]  ;;  %v1996_v38 = vsel %vm775_vm7, %v3557_v60, %v3571_v42 }
 0x7c3   :  { %v1900_v56 = vadd.f32 %v1896_v12, %v1872_v23  ;;  %v1881_v46 = vpop.permute.xlu1 %1880  ;;  %v3948_v12 = vld [vmem:[#allocation26_spill] sm:$0xff]  ;;  %v2063_v40 = vmul.f32 %v2422_v13, %v2059_v54 }
 0x7c4   :  { %v1882_v1 = vsel %vm483_vm3, %v3555_v3, %v1881_v46  ;;  %v1885_v33 = vsel %vm483_vm3, %v1881_v46, %v3545_v45  ;;  %v1968_v3 = vsel %vm702_vm6, %v3553_v35, %v3567_v57  ;;  %v1866_v45 = vmul.f32 %v1862_v25, %v3947_v29  ;;  %v3949_v57 = vld [vmem:[#allocation21_spill] sm:$0xff] }
 0x7c5   :  { %v1890_v59 = vmul.f32 %v3528_v0, %v1885_v33  ;;  %v1893_v30 = vmul.f32 %v3528_v0, %v1882_v1  ;;  %v1928_v10 = vadd.f32 %v1924_v44, %v1900_v56  ;;  %v1869_v58 = vmul.f32 %v1865_v17, %v3948_v12 }
 0x7c6   :  { %v2011_v0 = vadd.f32 %v2007_v28, %v1983_v43  ;;  %v1974_v46 = vmul.f32 %v3530_v22, %v1968_v3 }
 0x7c7   :  { %v1909_v20 = vpop.permute.xlu1 %1908  ;;  %v3667_v36 = vadd.f32 %v1952_v52, %v1928_v10  ;;  %v1894_v51 = vmul.f32 %v1890_v59, %v3949_v57  ;;  %v1897_v23 = vmul.f32 %v1893_v30, %v3950_v31  ;;  %v1873_v21 = vadd.f32 %v1869_v58, %v1845_v27 }
 0x7c8   :  { %v1910_v19 = vsel %vm556_vm4, %v3559_v7, %v1909_v20  ;;  %v1913_v39 = vsel %vm556_vm4, %v1909_v20, %v3547_v47  ;;  %v2039_v32 = vadd.f32 %v2035_v53, %v2011_v0  ;;  %v1870_v7 = vadd.f32 %v1866_v45, %v3468_v14  ;;  %v3951_v47 = vld [vmem:[#allocation28_spill] sm:$0xff] }
 0x7c9   :  { %v1918_v4 = vmul.f32 %v3537_v11, %v1913_v39  ;;  %v1921_v44 = vmul.f32 %v3537_v11, %v1910_v19  ;;  %v1901_v1 = vadd.f32 %v1897_v23, %v1873_v21  ;;  %v2002_v52 = vmul.f32 %v3532_v9, %v1996_v38  ;;  %v3952_v19 = vld [vmem:[#allocation31_spill] sm:$0xff]  ;;  %v3954_v38 = vld [vmem:[#allocation30_spill] sm:$0xff] }
 0x7ca   :  { %v2067_v42 = vadd.f32 %v2063_v40, %v2039_v32  ;;  %v1898_v14 = vadd.f32 %v1894_v51, %v1870_v7  ;;  %v1978_v27 = vmul.f32 %v1974_v46, %v2808_v6 }
 0x7cb   :  { %v1922_v25 = vmul.f32 %v1918_v4, %v2837_v37  ;;  %v1925_v17 = vmul.f32 %v1921_v44, %v3951_v47  ;;  %v1937_v56 = vpop.permute.xlu1 %1936  ;;  %v2006_v12 = vmul.f32 %v2002_v52, %v3927_v63  ;;  %v3953_v4 = vld [vmem:[#allocation29_spill] sm:$0xff]  ;;  %v3955_v47 = vld [vmem:[#allocation32_spill] sm:$0xff] }
 0x7cc   :  { %v1938_v11 = vsel %vm629_vm5, %v3561_v16, %v1937_v56  ;;  %v1941_v28 = vsel %vm629_vm5, %v1937_v56, %v3551_v61  ;;  %v3696_v54 = vpop.permute.xlu0 %2072  ;;  %v2024_v16 = vsel %vm848_vm8, %v3549_v5, %v3583_v8 }
 0x7cd   :  { %v1946_v37 = vmul.f32 %v3541_v2, %v1941_v28  ;;  %v1949_v33 = vmul.f32 %v3541_v2, %v1938_v11  ;;  %v3706_v59 = vadd.f32 %v3696_v54, %v2067_v42  ;;  %v1926_v61 = vadd.f32 %v1922_v25, %v1898_v14  ;;  %v3956_v11 = vld [vmem:[#allocation33_spill] sm:$0xff] }
 0x7ce   :  { %v1929_v30 = vadd.f32 %v1925_v17, %v1901_v1  ;;  %v2052_v2 = vsel %vm921_vm9, %v3595_v15, %v3626_v50  ;;  %v2030_v29 = vmul.f32 %v3539_v18, %v2024_v16 }
 0x7cf   :  { %v1950_v10 = vmul.f32 %v1946_v37, %v2846_v48  ;;  %v1953_v43 = vmul.f32 %v1949_v33, %v2849_v41  ;;  %v1965_v53 = vpop.permute.xlu1 %1964  ;;  %v2084_v3 = vmul.f32 0.044715, %v3706_v59  ;;  %v2058_v50 = vmul.f32 %v3543_v26, %v2052_v2  ;;  %v2424_v2 = vld [vmem:[%s3793_s1 + $0x30] ss:$0 sm:$0xff] }
 0x7d0   :  { %v1966_v8 = vsel %vm702_vm6, %v3563_v55, %v1965_v53  ;;  %v1969_v41 = vsel %vm702_vm6, %v1965_v53, %v3553_v35  ;;  %v2034_v63 = vmul.f32 %v2030_v29, %v3952_v19 }
 0x7d1   :  { %v1954_v45 = vadd.f32 %v1950_v10, %v1926_v61  ;;  %v1957_v48 = vadd.f32 %v1953_v43, %v1929_v30  ;;  %v2088_v6 = vmul.f32 %v2084_v3, %v3706_v59  ;;  %v1976_v20 = vmul.f32 %v3530_v22, %v1966_v8 }
 0x7d2   :  { %v1977_v0 = vmul.f32 %v3530_v22, %v1969_v41  ;;  %v2423_v22 = vld [vmem:[%s3793_s1 + $0x20] ss:$0 sm:$0xff] }
 0x7d3   :  { %v1982_v58 = vadd.f32 %v1978_v27, %v1954_v45  ;;  %v1993_v55 = vpop.permute.xlu1 %1992  ;;  %v2092_v40 = vmul.f32 %v2088_v6, %v3706_v59  ;;  %v1980_v44 = vmul.f32 %v1976_v20, %v3953_v4 }
 0x7d4   :  { %v1994_v13 = vsel %vm775_vm7, %v3565_v34, %v1993_v55  ;;  %v1997_v35 = vsel %vm775_vm7, %v1993_v55, %v3557_v60  ;;  %v2062_v34 = vmul.f32 %v2423_v22, %v2058_v50  ;;  %v1981_v32 = vmul.f32 %v1977_v0, %v3954_v38 }
 0x7d5   :  { %v2010_v39 = vadd.f32 %v2006_v12, %v1982_v58  ;;  %v2004_v57 = vmul.f32 %v3532_v9, %v1994_v13  ;;  %v2005_v51 = vmul.f32 %v3532_v9, %v1997_v35  ;;  %v2096_v31 = vadd.f32 %v2092_v40, %v3706_v59 }
 0x7d6   :  { %v1984_v14 = vadd.f32 %v1980_v44, %v3667_v36  ;;  %v1985_v33 = vadd.f32 %v1981_v32, %v1957_v48  ;;  %v2080_v12 = vmul.f32 0.5, %v3706_v59 }
 0x7d7   :  { %v2038_v23 = vadd.f32 %v2034_v63, %v2010_v39  ;;  %v2021_v60 = vpop.permute.xlu1 %2020  ;;  %v2100_v21 = vmul.f32 0.7978846, %v2096_v31  ;;  %v2008_v17 = vmul.f32 %v2004_v57, %v3955_v47  ;;  %v2009_v28 = vmul.f32 %v2005_v51, %v3956_v11  ;;  %v3959_v11 = vld [vmem:[#allocation14_spill] sm:$0xff] }
 0x7d8   :  { %v2022_v7 = vsel %vm848_vm8, %v3576_v49, %v2021_v60  ;;  %v2025_v9 = vsel %vm848_vm8, %v2021_v60, %v3549_v5  ;;  %v3957_v49 = vld [vmem:[#allocation34_spill] sm:$0xff]  ;;  %v3958_v5 = vld [vmem:[#allocation35_spill] sm:$0xff] }
 0x7d9   :  { %v2066_v25 = vadd.f32 %v2062_v34, %v2038_v23  ;;  %v2032_v56 = vmul.f32 %v3539_v18, %v2022_v7  ;;  %v2033_v46 = vmul.f32 %v3539_v18, %v2025_v9  ;;  %2412 = vtanh.f32 %v2100_v21  ;;  %v2115_v34 = vld [vmem:[%s3801_s9] sm:$0xf]  ;;  %s2470_s9 = smov [#allocation2]  }
 0x7da   :  { %v2012_v30 = vadd.f32 %v2008_v17, %v1984_v14  ;;  %v2013_v43 = vadd.f32 %v2009_v28, %v1985_v33  ;;  %s2285_s25 = sshll.u32 %s2470_s9, 4  ;;  %v3960_v33 = vld [vmem:[#allocation24_spill] sm:$0xff]  ;;  %s2286_s25 = int_to_ptr.vmem [resolvable:$true] %s2285_s25 }
 0x7db   :  { %v2075_v42 = vadd.f32 %v3696_v54, %v2066_v25  ;;  %v2036_v1 = vmul.f32 %v2032_v56, %v3957_v49  ;;  %v2049_v37 = vpop.permute.xlu1 %2048  ;;  %v2037_v52 = vmul.f32 %v2033_v46, %v3958_v5  ;;  %s2426_s3 = scalar_lea.vmem %s2286_s25, 256  ;;  %p2431_p1 = scmp.lt.s32.totalorder %s2286_s25, %s2286_s25 }
 0x7dc   :  { %v2050_v16 = vsel %vm921_vm9, %v3634_v24, %v2049_v37  ;;  %v2053_v18 = vsel %vm921_vm9, %v2049_v37, %v3595_v15  ;;  %p2427_p0 = scmp.ne.s32.totalorder %s2286_s25, %s2426_s3  ;;  %p2432_p2 = scmp.lt.s32.totalorder %s2426_s3, %s2426_s3 }
 0x7dd   :  { %v2083_v61 = vmul.f32 0.044715, %v2075_v42  ;;  %v2060_v10 = vmul.f32 %v3543_v26, %v2050_v16  ;;  %v2061_v36 = vmul.f32 %v3543_v26, %v2053_v18  ;;  %v2040_v27 = vadd.f32 %v2036_v1, %v2012_v30 }
 0x7de   :  { %v2041_v3 = vadd.f32 %v2037_v52, %v2013_v43  ;;  %v2079_v31 = vmul.f32 0.5, %v2075_v42  ;;  %p2433_p3 = por %p2432_p2, %p2431_p1 }
 0x7df   :  { %v2087_v53 = vmul.f32 %v2083_v61, %v2075_v42  ;;  %v2064_v8 = vmul.f32 %v2424_v2, %v2060_v10  ;;  %v2065_v15 = vmul.f32 %v2425_v62, %v2061_v36 }
 0x7e0   :  { %p2434_p4 = pnand %p2433_p3, %p2427_p0 }
 0x7e1   :  { %v2068_v24 = vadd.f32 %v2064_v8, %v2040_v27  ;;  %v2091_v29 = vmul.f32 %v2087_v53, %v2075_v42  ;;  %v2069_v45 = vadd.f32 %v2065_v15, %v2041_v3 }
 0x7e3   :  { %v2077_v48 = vadd.f32 %v3696_v54, %v2068_v24  ;;  %v2095_v41 = vadd.f32 %v2091_v29, %v2075_v42  ;;  %v2413_v26 = vpop.eup %2412  ;;  %v2078_v6 = vadd.f32 %v3696_v54, %v2069_v45 }
 0x7e4   :  { %v2108_v50 = vadd.f32 1.0, %v2413_v26 }
 0x7e5   :  { %v2099_v58 = vmul.f32 0.7978846, %v2095_v41  ;;  %v2085_v20 = vmul.f32 0.044715, %v2077_v48  ;;  %v2086_v55 = vmul.f32 0.044715, %v2078_v6 }
 0x7e6   :  { %v2112_v0 = vmul.f32 %v2108_v50, %v2080_v12  ;;  %v2081_v44 = vmul.f32 0.5, %v2077_v48  ;;  %v2082_v38 = vmul.f32 0.5, %v2078_v6 }
 0x7e7   :  { %2414 = vtanh.f32 %v2099_v58  ;;  %v2089_v13 = vmul.f32 %v2085_v20, %v2077_v48  ;;  %v2090_v35 = vmul.f32 %v2086_v55, %v2078_v6 }
 0x7e8   :  { %2125 = vmatprep.subr.mxu0 %v2112_v0 }
 0x7e9   :  { %v2093_v40 = vmul.f32 %v2089_v13, %v2077_v48  ;;  %v2094_v19 = vmul.f32 %v2090_v35, %v2078_v6 }
 0x7eb   :  { %v2097_v63 = vadd.f32 %v2093_v40, %v2077_v48  ;;  %v2098_v39 = vadd.f32 %v2094_v19, %v2078_v6 }
 0x7ec   :  { %v2119_v21 = vpop.permute.xlu1 %2118 }
 0x7ed   :  { %v2101_v57 = vmul.f32 0.7978846, %v2097_v63  ;;  %v2102_v51 = vmul.f32 0.7978846, %v2098_v39 }
 0x7ef   :  { %2416 = vtanh.f32 %v2101_v57 }
 0x7f0   :  { %2418 = vtanh.f32 %v2102_v51 }
 0x7f1   :  { %v2415_v54 = vpop.eup %2414 }
 0x7f2   :  { %v2107_v59 = vadd.f32 1.0, %v2415_v54 }
 0x7f4   :  { %v2111_v22 = vmul.f32 %v2107_v59, %v2079_v31 }
 0x7f6   :  { %2126 = vmatpush1.msra.mxu0 %v2111_v22 }
 0x7f7   :  { %2323 = vmatmul.mubr.msk.f32.vlgmr.msra.gmra.mrb[12].mxu0 %vm2121_vm12, %v2115_v34 }
 0x7f9   :  { %v2417_v23 = vpop.eup %2416 }
 0x7fa   :  { %v2419_v4 = vpop.eup %2418  ;;  %v2109_v60 = vadd.f32 1.0, %v2417_v23 }
 0x7fb   :  { %v2110_v32 = vadd.f32 1.0, %v2419_v4 }
 0x7fc   :  { %v2113_v7 = vmul.f32 %v2109_v60, %v2081_v44 }
 0x7fd   :  { %v2114_v9 = vmul.f32 %v2110_v32, %v2082_v38 }
 0x7ff   :  { %2196 = vmatprep.subr.mxu1 %v2114_v9 }
 0x800   :  { %2197 = vmatpush1.msra.mxu1 %v2113_v7 }
 0x801   :  { %2324 = vmatmul.mubr.msk.f32.vlgmr.msra.gmra.mrb[12].mxu1 %vm2121_vm12, %v2115_v34 }
 0x8ca   :  { %v2191_v25 = vpop.f32.mrb[12].mxu0 }
 0x8cb   :  { %v2192_v47 = vadd.f32 %v2191_v25, %v2119_v21  ;;  %v2193_v17 = vpop.f32.mrb[13].mxu0 }
 0x8cc   :  { %v2194_v56 = vadd.f32 %v2193_v17, %v2119_v21 }
 0x8ce   :  { %v2271_v46 = vcombine.low %v2192_v47, %v2194_v56 }
 0x8d0   :  { %v2275_v28 = vadd.f32 %v2271_v46, %v3959_v11 }
 0x8d2   :  { %2277 = vst [vmem:[#allocation2] sm:$0xff] %v2275_v28 }
 0x8d4   :  { %v2262_v42 = vpop.f32.mrb[12].mxu1 }
 0x8d5   :  { %v2263_v14 = vadd.f32 %v2262_v42, %v2119_v21  ;;  %v2264_v49 = vpop.f32.mrb[13].mxu1 }
 0x8d6   :  { %v2265_v1 = vadd.f32 %v2264_v49, %v2119_v21 }
 0x8d8   :  { %v2272_v37 = vcombine.low %v2263_v14, %v2265_v1 }
 0x8da   :  { %v2276_v5 = vadd.f32 %v2272_v37, %v3960_v33 }
 0x8dc   :  { %2278 = vst [vmem:[#allocation2 + $0x8] sm:$0xff] %v2276_v5 }
 0x8dd   :  { %2437 = shalt.err (!%p2434_p4)
}
 0x8de   :  { %s2438_s28 = scalar_lea.hbm %s3802_s10, 256 }
 0x8df   :  { %p2439_p5 = scmp.ne.s32.totalorder %s3802_s10, %s2438_s28  ;;  %p2442_p6 = scmp.lt.u32.totalorder %s2438_s28, %s3802_s10 }
 0x8e1   :  { %p2444_p7 = pnand %p2442_p6, %p2439_p5 }
 0x8e3   :  { %2447 = shalt.err (!%p2444_p7)
}
 0x8e4   :  { %2288 = dma.vmem_to_hbm [thread:$0]  %s2286_s25, 256, %s3802_s10, [#allocation3]  }
 0x8e5   :  { %2448 = dma.done.wait [#allocation3], 256  }
 0x8e6   :  { %2449 = vsyncadd [#allocation3], 4294967040 }
 0x8e7   :  { %2292 = vsyncpa [#allocation3], 1 }

</bundles_post_ra>
